<compile_context>
chip_gen: v7x
topology: tpu7x:2x2x1
jax: 0.10.0
libtpu: 0.0.40
codegen_flags: <defaults>
</compile_context>

<pallas_src>
import functools
from typing import NamedTuple, Tuple

import jax
import jax.numpy as jnp
from jax.experimental import pallas as pl
from jax.experimental.pallas import tpu as pltpu


def _round_up(n, m):
    return ((n + m - 1) // m) * m


def _cdiv(a, b):
    return (a + b - 1) // b


# -----------------------------------------------------------------------------
# Hardware detection (generation-specific VMEM cap & elementwise dtype).
# -----------------------------------------------------------------------------
def _tpu_caps():
    kind = ""
    try:
        kind = jax.devices()[0].device_kind.lower()
    except Exception:
        pass
    vmem = None
    try:
        vmem = int(pltpu.get_tpu_info().vmem_capacity_bytes)
    except Exception:
        vmem = None
    if vmem is None or vmem <= 0:
        vmem = (64 << 20) if "v7" in kind else (128 << 20)
    # v5e has no bf16 VPU/EUP -> keep elementwise math in f32 there.
    is_v5e = ("v5 lite" in kind) or ("v5e" in kind) or ("v5lite" in kind)
    return vmem, is_v5e


# -----------------------------------------------------------------------------
# Activations (mirror the PyTorch branches of Encoder.forward).
# Written with exp/log/maximum only so they lower cleanly inside Pallas and
# can run in bf16 on v6e/v7x.
# -----------------------------------------------------------------------------
def _sigmoid(x):
    # 1/(1+exp(-x)) is already overflow-safe: exp(-x)->inf gives 0, ->0 gives 1.
    return 1.0 / (1.0 + jnp.exp(-x))


def _softplus(x):
    # stable softplus: log(1 + exp(-|x|)) + max(x, 0)
    return jnp.log(1.0 + jnp.exp(-jnp.abs(x))) + jnp.maximum(x, 0.0)


def _apply_activation(x, av):
    if av == "relu":
        return jnp.maximum(x, 0.0)
    if av == "sigmoid":
        return _sigmoid(x)
    if av == "tanh":
        return jnp.tanh(x)
    if av == "leaky_relu":
        return jnp.where(x >= 0, x, 0.01 * x)
    if av == "swish":
        return x * _sigmoid(x)
    if av == "mish":
        return x * jnp.tanh(_softplus(x))
    if av == "prelu":
        # nn.PReLU() is constructed inside forward() -> default (untrained) 0.25.
        return jnp.where(x >= 0, x, 0.25 * x)
    if av == "elu":
        return jnp.where(x > 0, x, jnp.expm1(x))
    raise ValueError(f"unsupported activation: {av}")


# -----------------------------------------------------------------------------
# Fused kernel: whole MLP for one batch tile, all layers unrolled.
# -----------------------------------------------------------------------------
def _encoder_kernel(*refs, num_layers, av, compute_dtype, elementwise_dtype):
    # refs = (x, w_0..w_{L-1}, b_0..b_{L-1}, out)
    x_ref = refs[0]
    w_refs = refs[1:1 + num_layers]
    b_refs = refs[1 + num_layers:1 + 2 * num_layers]
    o_ref = refs[1 + 2 * num_layers]

    h = x_ref[...]                                     # (tile_b, d0_pad) compute_dtype
    for li in range(num_layers - 1):
        # MXU matmul with f32 accumulation; per-layer padded shapes.
        z = jnp.dot(h, w_refs[li][...], preferred_element_type=jnp.float32)
        # bias add + activation on VPU/EUP (bf16 on v6e/v7x, f32 on v5e).
        z = z.astype(elementwise_dtype) + b_refs[li][...].astype(elementwise_dtype)
        h = _apply_activation(z, av).astype(compute_dtype)

    # output layer: matmul + bias, no activation, f32 writeback (lane-dense).
    z = jnp.dot(h, w_refs[num_layers - 1][...], preferred_element_type=jnp.float32)
    o_ref[...] = (z + b_refs[num_layers - 1][...]).astype(o_ref.dtype)


# -----------------------------------------------------------------------------
# One-time parameter packing (hoisted out of the per-call hot path).
# -----------------------------------------------------------------------------
class PackedEncoder(NamedTuple):
    weights: Tuple[jax.Array, ...]        # per-layer (fi_pad, fo_pad), compute dtype
    biases: Tuple[jax.Array, ...]         # per-layer (1, fo_pad), f32
    dims: Tuple[Tuple[int, int], ...]     # unpadded (fan_in, fan_out)
    padded_dims: Tuple[Tuple[int, int], ...]
    use_bf16: bool


def pack_encoder_params(weights, biases, *, use_bf16=True):
    """Pad & cast per-layer parameters ONCE. weights[i]: (in_i, out_i)."""
    compute_dtype = jnp.bfloat16 if use_bf16 else jnp.float32
    pw, pb, dims, pdims = [], [], [], []
    for w, b in zip(weights, biases):
        fi, fo = int(w.shape[0]), int(w.shape[1])
        fi_p, fo_p = _round_up(fi, 128), _round_up(fo, 128)
        wp = jnp.zeros((fi_p, fo_p), compute_dtype).at[:fi, :fo].set(
            w.astype(compute_dtype))
        bp = jnp.zeros((1, fo_p), jnp.float32).at[:, :fo].set(
            jnp.reshape(b, (1, fo)).astype(jnp.float32))
        pw.append(wp)
        pb.append(bp)
        dims.append((fi, fo))
        pdims.append((fi_p, fo_p))
    return PackedEncoder(tuple(pw), tuple(pb), tuple(dims), tuple(pdims), use_bf16)


def _pick_batch_tiling(batch, b_align, tile_b_max):
    b_pad = _round_up(max(batch, 1), b_align)
    if b_pad < 2 * b_align:
        return b_pad, b_pad
    # >=2 grid steps (lets "parallel" use v7x's second TensorCore), and a
    # divisor-like tile size so the last step wastes < b_align rows.
    num_tiles = max(2, _cdiv(b_pad, tile_b_max))
    tile_b = _round_up(_cdiv(b_pad, num_tiles), b_align)
    num_tiles = _cdiv(b_pad, tile_b)
    return num_tiles * tile_b, tile_b


# -----------------------------------------------------------------------------
# Forward pass (hot path).
# -----------------------------------------------------------------------------
def encoder_forward_packed(x, packed: PackedEncoder, av="tanh", *, tile_b_max=1024):
    num_layers = len(packed.weights)
    emb_dim = packed.dims[0][0]
    out_dim = packed.dims[-1][1]
    d0_pad = packed.padded_dims[0][0]
    out_pad = packed.padded_dims[-1][1]
    batch = x.shape[0]

    use_bf16 = packed.use_bf16
    compute_dtype = jnp.bfloat16 if use_bf16 else jnp.float32
    itemsize = jnp.dtype(compute_dtype).itemsize

    vmem_phys, is_v5e = _tpu_caps()
    vmem_cap = (vmem_phys * 3) // 4          # ~96 MiB on v5e/v6e, ~48 MiB on v7x
    elementwise_dtype = compute_dtype if (use_bf16 and not is_v5e) else jnp.float32

    b_align = 16 if use_bf16 else 8
    b_pad, tile_b = _pick_batch_tiling(batch, b_align, tile_b_max)

    w_bytes = sum(fi * fo for fi, fo in packed.padded_dims) * itemsize
    b_bytes = sum(fo for _, fo in packed.padded_dims) * 4
    max_fo = max(fo for _, fo in packed.padded_dims)

    def vmem_need(tb, param_bufs):
        return (2 * tb * d0_pad * itemsize          # input tile (double-buffered)
                + 2 * tb * out_pad * 4              # output tile (double-buffered)
                + param_bufs * (w_bytes + b_bytes)  # resident params
                + 3 * tb * max_fo * 4)              # live intermediates (slack)

    # Shrink the batch tile if the estimate would not fit under the VMEM cap.
    while tile_b > b_align and vmem_need(tile_b, 1) + (4 << 20) > vmem_cap:
        tile_b = _round_up(max(tile_b // 2, b_align), b_align)
    b_pad = _cdiv(b_pad, tile_b) * tile_b
    grid = (b_pad // tile_b,)
    # TODO(synk): if w_bytes alone ever approaches vmem_cap (very wide encoder
    # on v7x), switch to weight streaming instead of resident per-layer weights.

    x_p = jnp.zeros((b_pad, d0_pad), compute_dtype)
    x_p = x_p.at[:batch, :emb_dim].set(x.astype(compute_dtype))

    kernel = functools.partial(
        _encoder_kernel, num_layers=num_layers, av=av,
        compute_dtype=compute_dtype, elementwise_dtype=elementwise_dtype)

    trans_per_elem = {"tanh": 1, "sigmoid": 1, "swish": 1, "mish": 3, "elu": 1}.get(av, 0)
    cost = pl.CostEstimate(
        flops=int(2 * b_pad * sum(fi * fo for fi, fo in packed.padded_dims)),
        transcendentals=int(b_pad * trans_per_elem *
                            sum(fo for _, fo in packed.padded_dims[:-1])),
        bytes_accessed=int(b_pad * d0_pad * itemsize + w_bytes + b_bytes
                           + b_pad * out_pad * 4),
    )

    x_spec = pl.BlockSpec((tile_b, d0_pad), lambda i: (i, 0))
    o_spec = pl.BlockSpec((tile_b, out_pad), lambda i: (i, 0))

    def make_param_specs(single_buffer):
        specs = []
        for fi_p, fo_p in packed.padded_dims:        # weights
            if single_buffer:
                specs.append(pl.BlockSpec((fi_p, fo_p), lambda i: (0, 0),
                                          pipeline_mode=pl.Buffered(1)))
            else:
                specs.append(pl.BlockSpec((fi_p, fo_p), lambda i: (0, 0)))
        for _, fo_p in packed.padded_dims:           # biases
            if single_buffer:
                specs.append(pl.BlockSpec((1, fo_p), lambda i: (0, 0),
                                          pipeline_mode=pl.Buffered(1)))
            else:
                specs.append(pl.BlockSpec((1, fo_p), lambda i: (0, 0)))
        return specs

    def run(single_buffer):
        param_bufs = 1 if single_buffer else 2
        limit = int(min(max(vmem_need(tile_b, param_bufs) + (4 << 20), 16 << 20),
                        vmem_cap))
        return pl.pallas_call(
            kernel,
            out_shape=jax.ShapeDtypeStruct((b_pad, out_pad), jnp.float32),
            grid=grid,
            in_specs=[x_spec] + make_param_specs(single_buffer),
            out_specs=o_spec,
            compiler_params=pltpu.CompilerParams(
                dimension_semantics=("parallel",),
                vmem_limit_bytes=limit,
            ),
            cost_estimate=cost,
        )(x_p, *packed.weights, *packed.biases)

    try:
        out = run(single_buffer=True)     # grid-invariant params: single buffer
    except Exception:
        out = run(single_buffer=False)    # fallback if Buffered(1) unsupported

    return out[:batch, :out_dim]


def encoder_forward(x, weights, biases, av="tanh", *, use_bf16=True, tile_b_max=1024):
    packed = pack_encoder_params(weights, biases, use_bf16=use_bf16)
    return encoder_forward_packed(x, packed, av=av, tile_b_max=tile_b_max)


# -----------------------------------------------------------------------------
# Deterministic parameter construction (mirrors Encoder.__init__ shape logic)
# -----------------------------------------------------------------------------
def build_encoder_params(key, emb_dim, layers_num):
    """Returns (weights, biases): weights (in, out), biases (1, out)."""
    dims = []
    num_layer_dim = emb_dim * 2 ** (layers_num - 2)
    dims.append((emb_dim, num_layer_dim))            # input_layer
    for _ in range(layers_num - 2):
        if num_layer_dim > emb_dim:
            if num_layer_dim / 2 > emb_dim:
                dims.append((num_layer_dim, num_layer_dim // 2))
                num_layer_dim = num_layer_dim // 2
            else:
                dims.append((num_layer_dim, emb_dim))
                num_layer_dim = emb_dim
        else:
            dims.append((emb_dim, emb_dim))
            num_layer_dim = emb_dim
    dims.append((num_layer_dim, emb_dim))            # output_layer

    weights, biases = [], []
    for (fan_in, fan_out) in dims:
        key, kw, kb = jax.random.split(key, 3)
        bound = 1.0 / jnp.sqrt(jnp.float32(fan_in))  # PyTorch Linear default init
        w = jax.random.uniform(kw, (fan_in, fan_out), jnp.float32, -bound, bound)
        b = jax.random.uniform(kb, (1, fan_out), jnp.float32, -bound, bound)
        weights.append(w)
        biases.append(b)
    return weights, biases


# -----------------------------------------------------------------------------
# Pure-JAX reference for correctness checking
# -----------------------------------------------------------------------------
def encoder_reference(x, weights, biases, av="tanh"):
    h = x.astype(jnp.float32)
    for w, b in zip(weights[:-1], biases[:-1]):
        h = _apply_activation(h @ w + jnp.reshape(b, (1, -1)), av)
    return h @ weights[-1] + jnp.reshape(biases[-1], (1, -1))


if __name__ == "__main__":
    emb_dim = 32
    layers_num = 4      # -> dims: 32 -> 128 -> 64 -> 32 -> 32
    batch = 16          # f32 path: 2 grid steps of 8 rows each (exercises tiling)

    key = jax.random.PRNGKey(0)
    key, kx, kp = jax.random.split(key, 3)
    x = jax.random.normal(kx, (batch, emb_dim), jnp.float32)
    weights, biases = build_encoder_params(kp, emb_dim, layers_num)

    packed_f32 = pack_encoder_params(weights, biases, use_bf16=False)
    packed_bf16 = pack_encoder_params(weights, biases, use_bf16=True)

    # Exact f32-matmul path on several activation branches (tight tolerance),
    # specifically covering the sigmoid / swish paths flagged in review.
    for av in ("tanh", "sigmoid", "swish", "elu"):
        ref = encoder_reference(x, weights, biases, av=av)
        out = jax.block_until_ready(encoder_forward_packed(x, packed_f32, av=av))
        assert out.shape == (batch, emb_dim), (av, out.shape)
        assert jnp.allclose(out, ref, atol=1e-5, rtol=1e-5), f"f32 mismatch ({av})"

    # Default fast path (bf16 matmul operands, bf16 elementwise on v6e/v7x,
    # f32 MXU accumulation): looser tolerance.
    ref = encoder_reference(x, weights, biases, av="tanh")
    out = jax.block_until_ready(encoder_forward_packed(x, packed_bf16, av="tanh"))
    assert out.shape == (batch, emb_dim)
    assert jnp.allclose(out, ref, atol=5e-2, rtol=5e-2), "bf16 mismatch vs reference"

    print("KERNEL_OK")
</pallas_src>

<mosaic_0001>
module attributes {stable_mosaic.version = 11 : i64} {
  func.func @_encoder_kernel(%arg0: i32, %arg1: memref<8x128xf32, #tpu.memory_space<vmem>>, %arg2: memref<128x128xf32, #tpu.memory_space<vmem>>, %arg3: memref<128x128xf32, #tpu.memory_space<vmem>>, %arg4: memref<128x128xf32, #tpu.memory_space<vmem>>, %arg5: memref<128x128xf32, #tpu.memory_space<vmem>>, %arg6: memref<1x128xf32, #tpu.memory_space<vmem>>, %arg7: memref<1x128xf32, #tpu.memory_space<vmem>>, %arg8: memref<1x128xf32, #tpu.memory_space<vmem>>, %arg9: memref<1x128xf32, #tpu.memory_space<vmem>>, %arg10: memref<8x128xf32, #tpu.memory_space<vmem>>) attributes {dimension_semantics = [#tpu.dimension_semantics<parallel>], iteration_bounds = array<i64: 2>, scalar_prefetch = 0 : i64, scratch_operands = 0 : i64, tpu.core_type = #tpu.core_type<tc>, window_params = [{transform_indices = @transform_0, window_bounds = array<i64: 8, 128>}, {pipeline_mode = #tpu.pipeline_mode<synchronous>, transform_indices = @transform_1, window_bounds = array<i64: 128, 128>}, {pipeline_mode = #tpu.pipeline_mode<synchronous>, transform_indices = @transform_2, window_bounds = array<i64: 128, 128>}, {pipeline_mode = #tpu.pipeline_mode<synchronous>, transform_indices = @transform_3, window_bounds = array<i64: 128, 128>}, {pipeline_mode = #tpu.pipeline_mode<synchronous>, transform_indices = @transform_4, window_bounds = array<i64: 128, 128>}, {pipeline_mode = #tpu.pipeline_mode<synchronous>, transform_indices = @transform_5, window_bounds = array<i64: 1, 128>}, {pipeline_mode = #tpu.pipeline_mode<synchronous>, transform_indices = @transform_6, window_bounds = array<i64: 1, 128>}, {pipeline_mode = #tpu.pipeline_mode<synchronous>, transform_indices = @transform_7, window_bounds = array<i64: 1, 128>}, {pipeline_mode = #tpu.pipeline_mode<synchronous>, transform_indices = @transform_8, window_bounds = array<i64: 1, 128>}, {transform_indices = @transform_9, window_bounds = array<i64: 8, 128>}]} {
    %c0 = arith.constant 0 : index
    %c0_0 = arith.constant 0 : index
    %0 = vector.load %arg1[%c0, %c0_0] : memref<8x128xf32, #tpu.memory_space<vmem>>, vector<8x128xf32>
    %c0_1 = arith.constant 0 : index
    %c0_2 = arith.constant 0 : index
    %1 = vector.load %arg2[%c0_1, %c0_2] : memref<128x128xf32, #tpu.memory_space<vmem>>, vector<128x128xf32>
    %cst = arith.constant dense<0.000000e+00> : vector<8x128xf32>
    %2 = tpu.matmul %0, %1, %cst {dimension_numbers = #tpu.dot_dimension_numbers<[1], [0], [0], [1], [0, 0, 1, 1], [], []>} : vector<8x128xf32>, vector<128x128xf32>, vector<8x128xf32> -> vector<8x128xf32>
    %c0_3 = arith.constant 0 : index
    %c0_4 = arith.constant 0 : index
    %3 = vector.load %arg6[%c0_3, %c0_4] : memref<1x128xf32, #tpu.memory_space<vmem>>, vector<1x128xf32>
    %4 = vector.broadcast %3 : vector<1x128xf32> to vector<8x128xf32>
    %5 = arith.addf %2, %4 : vector<8x128xf32>
    %6 = math.tanh %5 : vector<8x128xf32>
    %c0_5 = arith.constant 0 : index
    %c0_6 = arith.constant 0 : index
    %7 = vector.load %arg3[%c0_5, %c0_6] : memref<128x128xf32, #tpu.memory_space<vmem>>, vector<128x128xf32>
    %cst_7 = arith.constant dense<0.000000e+00> : vector<8x128xf32>
    %8 = tpu.matmul %6, %7, %cst_7 {dimension_numbers = #tpu.dot_dimension_numbers<[1], [0], [0], [1], [0, 0, 1, 1], [], []>} : vector<8x128xf32>, vector<128x128xf32>, vector<8x128xf32> -> vector<8x128xf32>
    %c0_8 = arith.constant 0 : index
    %c0_9 = arith.constant 0 : index
    %9 = vector.load %arg7[%c0_8, %c0_9] : memref<1x128xf32, #tpu.memory_space<vmem>>, vector<1x128xf32>
    %10 = vector.broadcast %9 : vector<1x128xf32> to vector<8x128xf32>
    %11 = arith.addf %8, %10 : vector<8x128xf32>
    %12 = math.tanh %11 : vector<8x128xf32>
    %c0_10 = arith.constant 0 : index
    %c0_11 = arith.constant 0 : index
    %13 = vector.load %arg4[%c0_10, %c0_11] : memref<128x128xf32, #tpu.memory_space<vmem>>, vector<128x128xf32>
    %cst_12 = arith.constant dense<0.000000e+00> : vector<8x128xf32>
    %14 = tpu.matmul %12, %13, %cst_12 {dimension_numbers = #tpu.dot_dimension_numbers<[1], [0], [0], [1], [0, 0, 1, 1], [], []>} : vector<8x128xf32>, vector<128x128xf32>, vector<8x128xf32> -> vector<8x128xf32>
    %c0_13 = arith.constant 0 : index
    %c0_14 = arith.constant 0 : index
    %15 = vector.load %arg8[%c0_13, %c0_14] : memref<1x128xf32, #tpu.memory_space<vmem>>, vector<1x128xf32>
    %16 = vector.broadcast %15 : vector<1x128xf32> to vector<8x128xf32>
    %17 = arith.addf %14, %16 : vector<8x128xf32>
    %18 = math.tanh %17 : vector<8x128xf32>
    %c0_15 = arith.constant 0 : index
    %c0_16 = arith.constant 0 : index
    %19 = vector.load %arg5[%c0_15, %c0_16] : memref<128x128xf32, #tpu.memory_space<vmem>>, vector<128x128xf32>
    %cst_17 = arith.constant dense<0.000000e+00> : vector<8x128xf32>
    %20 = tpu.matmul %18, %19, %cst_17 {dimension_numbers = #tpu.dot_dimension_numbers<[1], [0], [0], [1], [0, 0, 1, 1], [], []>} : vector<8x128xf32>, vector<128x128xf32>, vector<8x128xf32> -> vector<8x128xf32>
    %c0_18 = arith.constant 0 : index
    %c0_19 = arith.constant 0 : index
    %21 = vector.load %arg9[%c0_18, %c0_19] : memref<1x128xf32, #tpu.memory_space<vmem>>, vector<1x128xf32>
    %22 = vector.broadcast %21 : vector<1x128xf32> to vector<8x128xf32>
    %23 = arith.addf %20, %22 : vector<8x128xf32>
    %c0_20 = arith.constant 0 : index
    %c0_21 = arith.constant 0 : index
    %24 = vector.load %arg10[%c0_20, %c0_21] : memref<8x128xf32, #tpu.memory_space<vmem>>, vector<8x128xf32>
    tpu.vector_store %arg10[%c0_20, %c0_21], %23 {strides = array<i32>} : memref<8x128xf32, #tpu.memory_space<vmem>>, vector<8x128xf32>,
    return
  }
  func.func @transform_0(%arg0: i32) -> (i32, i32) {
    %c0_i32 = arith.constant 0 : i32
    %c0_i32_0 = arith.constant 0 : i32
    return %arg0, %c0_i32 : i32, i32
  }
  func.func @transform_1(%arg0: i32) -> (i32, i32) {
    %c0_i32 = arith.constant 0 : i32
    %c0_i32_0 = arith.constant 0 : i32
    %c0_i32_1 = arith.constant 0 : i32
    return %c0_i32, %c0_i32_0 : i32, i32
  }
  func.func @transform_2(%arg0: i32) -> (i32, i32) {
    %c0_i32 = arith.constant 0 : i32
    %c0_i32_0 = arith.constant 0 : i32
    %c0_i32_1 = arith.constant 0 : i32
    return %c0_i32, %c0_i32_0 : i32, i32
  }
  func.func @transform_3(%arg0: i32) -> (i32, i32) {
    %c0_i32 = arith.constant 0 : i32
    %c0_i32_0 = arith.constant 0 : i32
    %c0_i32_1 = arith.constant 0 : i32
    return %c0_i32, %c0_i32_0 : i32, i32
  }
  func.func @transform_4(%arg0: i32) -> (i32, i32) {
    %c0_i32 = arith.constant 0 : i32
    %c0_i32_0 = arith.constant 0 : i32
    %c0_i32_1 = arith.constant 0 : i32
    return %c0_i32, %c0_i32_0 : i32, i32
  }
  func.func @transform_5(%arg0: i32) -> (i32, i32) {
    %c0_i32 = arith.constant 0 : i32
    %c0_i32_0 = arith.constant 0 : i32
    %c0_i32_1 = arith.constant 0 : i32
    return %c0_i32, %c0_i32_0 : i32, i32
  }
  func.func @transform_6(%arg0: i32) -> (i32, i32) {
    %c0_i32 = arith.constant 0 : i32
    %c0_i32_0 = arith.constant 0 : i32
    %c0_i32_1 = arith.constant 0 : i32
    return %c0_i32, %c0_i32_0 : i32, i32
  }
  func.func @transform_7(%arg0: i32) -> (i32, i32) {
    %c0_i32 = arith.constant 0 : i32
    %c0_i32_0 = arith.constant 0 : i32
    %c0_i32_1 = arith.constant 0 : i32
    return %c0_i32, %c0_i32_0 : i32, i32
  }
  func.func @transform_8(%arg0: i32) -> (i32, i32) {
    %c0_i32 = arith.constant 0 : i32
    %c0_i32_0 = arith.constant 0 : i32
    %c0_i32_1 = arith.constant 0 : i32
    return %c0_i32, %c0_i32_0 : i32, i32
  }
  func.func @transform_9(%arg0: i32) -> (i32, i32) {
    %c0_i32 = arith.constant 0 : i32
    %c0_i32_0 = arith.constant 0 : i32
    return %arg0, %c0_i32 : i32, i32
  }
}

module attributes {stable_mosaic.version = 11 : i64} {
  func.func @_encoder_kernel(%arg0: i32, %arg1: memref<8x128xf32, #tpu.memory_space<vmem>>, %arg2: memref<128x128xf32, #tpu.memory_space<vmem>>, %arg3: memref<128x128xf32, #tpu.memory_space<vmem>>, %arg4: memref<128x128xf32, #tpu.memory_space<vmem>>, %arg5: memref<128x128xf32, #tpu.memory_space<vmem>>, %arg6: memref<1x128xf32, #tpu.memory_space<vmem>>, %arg7: memref<1x128xf32, #tpu.memory_space<vmem>>, %arg8: memref<1x128xf32, #tpu.memory_space<vmem>>, %arg9: memref<1x128xf32, #tpu.memory_space<vmem>>, %arg10: memref<8x128xf32, #tpu.memory_space<vmem>>) attributes {dimension_semantics = [#tpu.dimension_semantics<parallel>], iteration_bounds = array<i64: 2>, scalar_prefetch = 0 : i64, scratch_operands = 0 : i64, tpu.core_type = #tpu.core_type<tc>, window_params = [{transform_indices = @transform_0, window_bounds = array<i64: 8, 128>}, {pipeline_mode = #tpu.pipeline_mode<synchronous>, transform_indices = @transform_1, window_bounds = array<i64: 128, 128>}, {pipeline_mode = #tpu.pipeline_mode<synchronous>, transform_indices = @transform_2, window_bounds = array<i64: 128, 128>}, {pipeline_mode = #tpu.pipeline_mode<synchronous>, transform_indices = @transform_3, window_bounds = array<i64: 128, 128>}, {pipeline_mode = #tpu.pipeline_mode<synchronous>, transform_indices = @transform_4, window_bounds = array<i64: 128, 128>}, {pipeline_mode = #tpu.pipeline_mode<synchronous>, transform_indices = @transform_5, window_bounds = array<i64: 1, 128>}, {pipeline_mode = #tpu.pipeline_mode<synchronous>, transform_indices = @transform_6, window_bounds = array<i64: 1, 128>}, {pipeline_mode = #tpu.pipeline_mode<synchronous>, transform_indices = @transform_7, window_bounds = array<i64: 1, 128>}, {pipeline_mode = #tpu.pipeline_mode<synchronous>, transform_indices = @transform_8, window_bounds = array<i64: 1, 128>}, {transform_indices = @transform_9, window_bounds = array<i64: 8, 128>}]} {
    %c0 = arith.constant 0 : index
    %c0_0 = arith.constant 0 : index
    %0 = vector.load %arg1[%c0, %c0_0] : memref<8x128xf32, #tpu.memory_space<vmem>>, vector<8x128xf32>
    %c0_1 = arith.constant 0 : index
    %c0_2 = arith.constant 0 : index
    %1 = vector.load %arg2[%c0_1, %c0_2] : memref<128x128xf32, #tpu.memory_space<vmem>>, vector<128x128xf32>
    %cst = arith.constant dense<0.000000e+00> : vector<8x128xf32>
    %2 = tpu.matmul %0, %1, %cst {dimension_numbers = #tpu.dot_dimension_numbers<[1], [0], [0], [1], [0, 0, 1, 1], [], []>} : vector<8x128xf32>, vector<128x128xf32>, vector<8x128xf32> -> vector<8x128xf32>
    %c0_3 = arith.constant 0 : index
    %c0_4 = arith.constant 0 : index
    %3 = vector.load %arg6[%c0_3, %c0_4] : memref<1x128xf32, #tpu.memory_space<vmem>>, vector<1x128xf32>
    %4 = vector.broadcast %3 : vector<1x128xf32> to vector<8x128xf32>
    %5 = arith.addf %2, %4 : vector<8x128xf32>
    %6 = math.tanh %5 : vector<8x128xf32>
    %c0_5 = arith.constant 0 : index
    %c0_6 = arith.constant 0 : index
    %7 = vector.load %arg3[%c0_5, %c0_6] : memref<128x128xf32, #tpu.memory_space<vmem>>, vector<128x128xf32>
    %cst_7 = arith.constant dense<0.000000e+00> : vector<8x128xf32>
    %8 = tpu.matmul %6, %7, %cst_7 {dimension_numbers = #tpu.dot_dimension_numbers<[1], [0], [0], [1], [0, 0, 1, 1], [], []>} : vector<8x128xf32>, vector<128x128xf32>, vector<8x128xf32> -> vector<8x128xf32>
    %c0_8 = arith.constant 0 : index
    %c0_9 = arith.constant 0 : index
    %9 = vector.load %arg7[%c0_8, %c0_9] : memref<1x128xf32, #tpu.memory_space<vmem>>, vector<1x128xf32>
    %10 = vector.broadcast %9 : vector<1x128xf32> to vector<8x128xf32>
    %11 = arith.addf %8, %10 : vector<8x128xf32>
    %12 = math.tanh %11 : vector<8x128xf32>
    %c0_10 = arith.constant 0 : index
    %c0_11 = arith.constant 0 : index
    %13 = vector.load %arg4[%c0_10, %c0_11] : memref<128x128xf32, #tpu.memory_space<vmem>>, vector<128x128xf32>
    %cst_12 = arith.constant dense<0.000000e+00> : vector<8x128xf32>
    %14 = tpu.matmul %12, %13, %cst_12 {dimension_numbers = #tpu.dot_dimension_numbers<[1], [0], [0], [1], [0, 0, 1, 1], [], []>} : vector<8x128xf32>, vector<128x128xf32>, vector<8x128xf32> -> vector<8x128xf32>
    %c0_13 = arith.constant 0 : index
    %c0_14 = arith.constant 0 : index
    %15 = vector.load %arg8[%c0_13, %c0_14] : memref<1x128xf32, #tpu.memory_space<vmem>>, vector<1x128xf32>
    %16 = vector.broadcast %15 : vector<1x128xf32> to vector<8x128xf32>
    %17 = arith.addf %14, %16 : vector<8x128xf32>
    %18 = math.tanh %17 : vector<8x128xf32>
    %c0_15 = arith.constant 0 : index
    %c0_16 = arith.constant 0 : index
    %19 = vector.load %arg5[%c0_15, %c0_16] : memref<128x128xf32, #tpu.memory_space<vmem>>, vector<128x128xf32>
    %cst_17 = arith.constant dense<0.000000e+00> : vector<8x128xf32>
    %20 = tpu.matmul %18, %19, %cst_17 {dimension_numbers = #tpu.dot_dimension_numbers<[1], [0], [0], [1], [0, 0, 1, 1], [], []>} : vector<8x128xf32>, vector<128x128xf32>, vector<8x128xf32> -> vector<8x128xf32>
    %c0_18 = arith.constant 0 : index
    %c0_19 = arith.constant 0 : index
    %21 = vector.load %arg9[%c0_18, %c0_19] : memref<1x128xf32, #tpu.memory_space<vmem>>, vector<1x128xf32>
    %22 = vector.broadcast %21 : vector<1x128xf32> to vector<8x128xf32>
    %23 = arith.addf %20, %22 : vector<8x128xf32>
    %c0_20 = arith.constant 0 : index
    %c0_21 = arith.constant 0 : index
    %24 = vector.load %arg10[%c0_20, %c0_21] : memref<8x128xf32, #tpu.memory_space<vmem>>, vector<8x128xf32>
    tpu.vector_store %arg10[%c0_20, %c0_21], %23 {strides = array<i32>} : memref<8x128xf32, #tpu.memory_space<vmem>>, vector<8x128xf32>,
    return
  }
  func.func @transform_0(%arg0: i32) -> (i32, i32) {
    %c0_i32 = arith.constant 0 : i32
    %c0_i32_0 = arith.constant 0 : i32
    return %arg0, %c0_i32 : i32, i32
  }
  func.func @transform_1(%arg0: i32) -> (i32, i32) {
    %c0_i32 = arith.constant 0 : i32
    %c0_i32_0 = arith.constant 0 : i32
    %c0_i32_1 = arith.constant 0 : i32
    return %c0_i32, %c0_i32_0 : i32, i32
  }
  func.func @transform_2(%arg0: i32) -> (i32, i32) {
    %c0_i32 = arith.constant 0 : i32
    %c0_i32_0 = arith.constant 0 : i32
    %c0_i32_1 = arith.constant 0 : i32
    return %c0_i32, %c0_i32_0 : i32, i32
  }
  func.func @transform_3(%arg0: i32) -> (i32, i32) {
    %c0_i32 = arith.constant 0 : i32
    %c0_i32_0 = arith.constant 0 : i32
    %c0_i32_1 = arith.constant 0 : i32
    return %c0_i32, %c0_i32_0 : i32, i32
  }
  func.func @transform_4(%arg0: i32) -> (i32, i32) {
    %c0_i32 = arith.constant 0 : i32
    %c0_i32_0 = arith.constant 0 : i32
    %c0_i32_1 = arith.constant 0 : i32
    return %c0_i32, %c0_i32_0 : i32, i32
  }
  func.func @transform_5(%arg0: i32) -> (i32, i32) {
    %c0_i32 = arith.constant 0 : i32
    %c0_i32_0 = arith.constant 0 : i32
    %c0_i32_1 = arith.constant 0 : i32
    return %c0_i32, %c0_i32_0 : i32, i32
  }
  func.func @transform_6(%arg0: i32) -> (i32, i32) {
    %c0_i32 = arith.constant 0 : i32
    %c0_i32_0 = arith.constant 0 : i32
    %c0_i32_1 = arith.constant 0 : i32
    return %c0_i32, %c0_i32_0 : i32, i32
  }
  func.func @transform_7(%arg0: i32) -> (i32, i32) {
    %c0_i32 = arith.constant 0 : i32
    %c0_i32_0 = arith.constant 0 : i32
    %c0_i32_1 = arith.constant 0 : i32
    return %c0_i32, %c0_i32_0 : i32, i32
  }
  func.func @transform_8(%arg0: i32) -> (i32, i32) {
    %c0_i32 = arith.constant 0 : i32
    %c0_i32_0 = arith.constant 0 : i32
    %c0_i32_1 = arith.constant 0 : i32
    return %c0_i32, %c0_i32_0 : i32, i32
  }
  func.func @transform_9(%arg0: i32) -> (i32, i32) {
    %c0_i32 = arith.constant 0 : i32
    %c0_i32_0 = arith.constant 0 : i32
    return %arg0, %c0_i32 : i32, i32
  }
}

</mosaic_0001>

<bundles_post_ra>
// kernel: tpu_custom_call.1
= control target key start
LH: loop header
LB: loop body
LE: loop exit
PB: predicated region body
PF: predicated region fallthrough
CT: control target
= control target key end

     0   :  { %s1961_s0 = inlined_call_operand.hbm [shape: f32[16,128], index: 0, kind: input, shape index: {}]   ;;  %s1962_s1 = inlined_call_operand.hbm [shape: f32[128,128], index: 1, kind: input, shape index: {}]   ;;  %s1963_s2 = inlined_call_operand.hbm [shape: f32[128,128], index: 2, kind: input, shape index: {}]   ;;  %s1964_s3 = inlined_call_operand.hbm [shape: f32[128,128], index: 3, kind: input, shape index: {}]   ;;  %s1965_s4 = inlined_call_operand.hbm [shape: f32[128,128], index: 4, kind: input, shape index: {}]   ;;  %s1966_s5 = inlined_call_operand.vmem [shape: f32[1,128], index: 5, kind: input, shape index: {}]   ;;  %s1967_s6 = inlined_call_operand.vmem [shape: f32[1,128], index: 6, kind: input, shape index: {}]   ;;  %s1968_s7 = inlined_call_operand.vmem [shape: f32[1,128], index: 7, kind: input, shape index: {}]   ;;  %s1969_s8 = inlined_call_operand.vmem [shape: f32[1,128], index: 8, kind: input, shape index: {}]   ;;  %s1970_s9 = inlined_call_operand.hbm [shape: f32[16,128], index: 9, kind: output, shape index: {}]  }
   0x1   :  { %1975 = sst [smem:[#allocation16_spill]] %s1962_s1 }
   0x2   :  { %1976 = sst [smem:[#allocation17_spill]] %s1970_s9 }
   0x3   :  { %14 = vsyncpa [#allocation3], 0 }
   0x4   :  { %16 = vsyncpa [#allocation3 + $0x1], 0 }
   0x5   :  { %17 = vsyncpa [#allocation6], 0 }
   0x6   :  { %18 = vsyncpa [#allocation9], 0 }
   0x7   :  { %19 = vsyncpa [#allocation4], 0 }
   0x8   :  { %21 = vsyncpa [#allocation4 + $0x1], 0  ;;  %s1610_s30 = smov 0   ;;  %s1612_s10 = smov 0  }
   0x9   :  { %s1614_s11 = smov 0   ;;  %s1616_s12 = smov 0  }
   0xa LB: > { %s1549_s13 = smov [#allocation5]   ;;  %s1631_s15 = sadd.s32 4294967295, %s1547_s12   ;;  %s1547_s12 = sphi %s1616_s12, %s1999_s12   ;;  %s1543_s11 = sphi %s1614_s11, %s1998_s11   ;;  %s1539_s10 = sphi %s1612_s10, %s1997_s10   ;;  %s1535_s30 = sphi %s1610_s30, %s1996_s30  }
   0xb   : > { %s264_s14 = sshll.u32 %s1549_s13, 4  ;;  %p906_p0 = scmp.ge.s32.totalorder %s1547_s12, 1  ;;  %s1636_s14 = int_to_ptr.vmem [resolvable:$true] %s264_s14 }
   0xc   : > { %p1972_p1 = scmp.eq.s32.totalorder %s1631_s15, 0  ;;  %p252_p2 = scmp.lt.s32.totalorder %s1547_s12, 3 }
   0xd   : > { %s1550_s17 = smov [#allocation8]   ;;  %s1551_s20 = smov [#allocation7]  }
   0xe   : > { %p1638_p3 = pnand %p906_p0, %p252_p2  ;;  %s290_s18 = sshll.u32 %s1550_s17, 4  ;;  %s1651_s18 = int_to_ptr.vmem [resolvable:$true] %s290_s18 }
   0xf   : > { %s277_s21 = sshll.u32 %s1551_s20, 4  ;;  %s1979_s1 = sld [smem:[#allocation16_spill]]  ;;  %s1653_s21 = int_to_ptr.vmem [resolvable:$true] %s277_s21 }
  0x10   : > { %s1977_s16 = scalar_select %p1638_p3, 1, 0 }
  0x11   : > { %p1253_p5 = pneg %p1638_p3 }
  0x13   : > { %p1647_p6 = pnand %p1253_p5, %p1972_p1 }
  0x15   : > { %s1331_s24 = scalar_lea.hbm %s1979_s1, 2048  ;;  %p1663_p8 = pneg %p1647_p6 }
  0x16   : > { %p1332_p7 = scmp.ne.s32.totalorder %s1979_s1, %s1331_s24  ;;  %p1338_p11 = scmp.lt.u32.totalorder %s1331_s24, %s1979_s1 }
  0x18   : > { %p1334_p9 = pnand %p1663_p8, %p1332_p7 }
  0x1a   : > { %p1335_p10 = pneg %p1334_p9 }
  0x1c   : > { %p1340_p12 = pnand %p1338_p11, %p1335_p10 }
  0x1e   : > { %1343 = shalt.err (!%p1340_p12)
}
  0x1f   : > { %s1344_s13 = scalar_lea.vmem %s1636_s14, 2048  ;;  %p1352_p5 = scmp.lt.s32.totalorder %s1636_s14, %s1636_s14 }
  0x20   : > { %p1345_p13 = scmp.ne.s32.totalorder %s1636_s14, %s1344_s13  ;;  %p1353_p4 = scmp.lt.s32.totalorder %s1344_s13, %s1344_s13 }
  0x22   : > { %p1347_p0 = pnand %p1345_p13, %p1663_p8  ;;  %p1354_p7 = por %p1353_p4, %p1352_p5 }
  0x24   : > { %p1348_p2 = pneg %p1347_p0 }
  0x26   : > { %p1355_p9 = pnand %p1354_p7, %p1348_p2 }
  0x28   : > { %1358 = shalt.err (!%p1355_p9)
}
  0x29   : > { %s1552_s17 = smov 128   ;;  %s1553_s20 = smov 8  }
  0x2a   : > { %1256 = dma.hbm_to_vmem [thread:$0]  (!%p1647_p6), %s1979_s1, 2048, %s1636_s14, [#allocation6], %s1552_s17, %s1552_s17, %s1553_s20  }
  0x2b   : > { %s1359_s26 = scalar_lea.hbm %s1964_s3, 2048 }
  0x2c   : > { %p1360_p4 = scmp.ne.s32.totalorder %s1964_s3, %s1359_s26  ;;  %p1366_p12 = scmp.lt.u32.totalorder %s1359_s26, %s1964_s3 }
  0x2e   : > { %p1362_p10 = pnand %p1360_p4, %p1663_p8 }
  0x30   : > { %p1363_p11 = pneg %p1362_p10 }
  0x32   : > { %p1368_p13 = pnand %p1366_p12, %p1363_p11 }
  0x34   : > { %1371 = shalt.err (!%p1368_p13)
}
  0x35   : > { %s1372_s14 = scalar_lea.vmem %s1651_s18, 2048  ;;  %p1380_p7 = scmp.lt.s32.totalorder %s1651_s18, %s1651_s18 }
  0x36   : > { %p1373_p0 = scmp.ne.s32.totalorder %s1651_s18, %s1372_s14  ;;  %p1381_p9 = scmp.lt.s32.totalorder %s1372_s14, %s1372_s14 }
  0x38   : > { %p1375_p2 = pnand %p1373_p0, %p1663_p8  ;;  %p1382_p4 = por %p1381_p9, %p1380_p7 }
  0x3a   : > { %p1376_p5 = pneg %p1375_p2 }
  0x3c   : > { %p1383_p10 = pnand %p1382_p4, %p1376_p5 }
  0x3e   : > { %1386 = shalt.err (!%p1383_p10)
}
  0x3f   : > { %1262 = dma.hbm_to_vmem [thread:$0]  (!%p1647_p6), %s1964_s3, 2048, %s1651_s18, [#allocation9], %s1552_s17, %s1552_s17, %s1553_s20  }
  0x40   : > { %s1387_s25 = scalar_lea.hbm %s1963_s2, 2048 }
  0x41   : > { %p1388_p11 = scmp.ne.s32.totalorder %s1963_s2, %s1387_s25  ;;  %p1394_p0 = scmp.lt.u32.totalorder %s1387_s25, %s1963_s2 }
  0x43   : > { %p1390_p12 = pnand %p1388_p11, %p1663_p8 }
  0x45   : > { %p1391_p13 = pneg %p1390_p12 }
  0x47   : > { %p1396_p2 = pnand %p1394_p0, %p1391_p13 }
  0x49   : > { %1399 = shalt.err (!%p1396_p2)
}
  0x4a   : > { %s1400_s18 = scalar_lea.vmem %s1653_s21, 2048  ;;  %p1408_p4 = scmp.lt.s32.totalorder %s1653_s21, %s1653_s21 }
  0x4b   : > { %p1401_p5 = scmp.ne.s32.totalorder %s1653_s21, %s1400_s18  ;;  %p1409_p10 = scmp.lt.s32.totalorder %s1400_s18, %s1400_s18 }
  0x4d   : > { %p1403_p7 = pnand %p1401_p5, %p1663_p8  ;;  %p1410_p11 = por %p1409_p10, %p1408_p4 }
  0x4f   : > { %p1404_p9 = pneg %p1403_p7 }
  0x51   : > { %p1411_p12 = pnand %p1410_p11, %p1404_p9 }
  0x53   : > { %1414 = shalt.err (!%p1411_p12)
}
  0x54   : > { %1259 = dma.hbm_to_vmem [thread:$0]  (!%p1647_p6), %s1963_s2, 2048, %s1653_s21, [#allocation6], %s1552_s17, %s1552_s17, %s1553_s20  }
  0x55   : > { %s1554_s22 = smov [#allocation10]   ;;  %s1415_s26 = scalar_lea.hbm %s1965_s4, 2048 }
  0x56   : > { %s303_s23 = sshll.u32 %s1554_s22, 4  ;;  %p1416_p13 = scmp.ne.s32.totalorder %s1965_s4, %s1415_s26  ;;  %s304_s23 = int_to_ptr.vmem [resolvable:$true] %s303_s23 }
  0x57   : > { %p1422_p5 = scmp.lt.u32.totalorder %s1415_s26, %s1965_s4 }
  0x58   : > { %p1418_p0 = pnand %p1416_p13, %p1663_p8 }
  0x5a   : > { %p1419_p2 = pneg %p1418_p0 }
  0x5c   : > { %p1424_p7 = pnand %p1422_p5, %p1419_p2 }
  0x5e   : > { %1427 = shalt.err (!%p1424_p7)
}
  0x5f   : > { %s1428_s21 = scalar_lea.vmem %s304_s23, 2048  ;;  %p1436_p11 = scmp.lt.s32.totalorder %s304_s23, %s304_s23 }
  0x60   : > { %p1429_p9 = scmp.ne.s32.totalorder %s304_s23, %s1428_s21  ;;  %p1437_p12 = scmp.lt.s32.totalorder %s1428_s21, %s1428_s21 }
  0x62   : > { %p1431_p4 = pnand %p1429_p9, %p1663_p8  ;;  %p1438_p1 = por %p1437_p12, %p1436_p11 }
  0x64   : > { %p1432_p10 = pneg %p1431_p4 }
  0x66   : > { %p1439_p3 = pnand %p1438_p1, %p1432_p10 }
  0x68   : > { %1442 = shalt.err (!%p1439_p3)
}
  0x69   : > { %1265 = dma.hbm_to_vmem [thread:$0]  (!%p1647_p6), %s1965_s4, 2048, %s304_s23, [#allocation9], %s1552_s17, %s1552_s17, %s1553_s20  }
  0x6a   : > { %s905_s19 = sadd.s32 4294967294, %s1547_s12   ;;  %s1762_s27 = sadd.s32 1, %s1547_s12  }
  0x6b   : > { %s31_s22 = ssub.s32 %s1547_s12, %s1762_s27  ;;  %s34_s24 = sadd.s32 1, %s1543_s11 }
  0x6c   : > { %p32_p1 = scmp.eq.s32.totalorder %s31_s22, 0  ;;  %p41_p3 = scmp.ne.s32.totalorder %s1543_s11, %s1539_s10 }
  0x6d   : > { %p42_p8 = scmp.eq.s32.totalorder %s1547_s12, 0  ;;  %p47_p13 = scmp.ne.s32.totalorder %s1539_s10, %s1535_s30 }
  0x6e   : > { %s1773_s25 = scalar_select %p32_p1, %s1543_s11, %s34_s24  }
  0x6f   : > { %p1775_p0 = por %p42_p8, %p41_p3  ;;  %p1982_p2 = scmp.eq.s32.totalorder %s1631_s15, 0 }
  0x70   : > { %p239_p5 = scmp.eq.s32.totalorder %s1631_s15, 1  ;;  %p245_p7 = scmp.eq.s32.totalorder %s905_s19, 1 }
  0x71   : > { %p1781_p6 = por %p1982_p2, %p47_p13  ;;  %p1278_p9 = scmp.lt.s32.totalorder %s1547_s12, 2 }
  0x72   : > { %s329_s20 = sand.u32 1, %s1543_s11   ;;  %p1788_p4 = por %p239_p5, %p41_p3 }
  0x73   : > { %p1792_p10 = por %p245_p7, %p47_p13  ;;  %s912_s29 = sshll.u32 %s329_s20, 3 }
  0x74   : > { %s1984_s23 = scalar_select %p1788_p4, 1, 0 }
  0x75   : > { %s1985_s28 = scalar_select %p1792_p10, 1, 0 }
  0x76   : > { %s913_s13 = sshll.u32 %s1547_s12, 7  ;;  %s333_s9 = scalar_lea.vmem [#allocation2], %s912_s29 }
  0x77   : > { %s1800_s14 = scalar_lea.hbm %s1961_s0, %s913_s13  ;;  %s340_s19 = sshll.u32 %s333_s9, 4  ;;  %s1802_s19 = int_to_ptr.vmem [resolvable:$true] %s340_s19 }
  0x78   : > { %p1806_p11 = pnand %p1278_p9, %p1775_p0  ;;  %s330_s24 = scalar_lea.sflag [#allocation3], %s329_s20 }
  0x79   : > { %s1443_s1 = scalar_lea.hbm %s1800_s14, 128  ;;  %s1448_s18 = scalar_lea.hbm %s1961_s0, 256 }
  0x7a   : > { %p1444_p12 = scmp.ne.s32.totalorder %s1800_s14, %s1443_s1  ;;  %p1445_p1 = pneg %p1806_p11 }
  0x7b   : > { %p1449_p13 = scmp.lt.u32.totalorder %s1800_s14, %s1961_s0  ;;  %p1450_p0 = scmp.lt.u32.totalorder %s1448_s18, %s1443_s1 }
  0x7c   : > { %p1446_p3 = pnand %p1445_p1, %p1444_p12  ;;  %p1452_p5 = scmp.lt.u32.totalorder %s1443_s1, %s1800_s14 }
  0x7d   : > { %p1451_p2 = por %p1450_p0, %p1449_p13 }
  0x7e   : > { %p1447_p8 = pneg %p1446_p3 }
  0x7f   : > { %p1453_p7 = por %p1452_p5, %p1451_p2 }
  0x81   : > { %p1454_p9 = pnand %p1453_p7, %p1447_p8 }
  0x83   : > { %1457 = shalt.err (!%p1454_p9)
}
  0x84   : > { %s1458_s20 = scalar_lea.vmem %s1802_s19, 128  ;;  %s1555_s9 = smov [#allocation2]  }
  0x85   : > { %p1459_p12 = scmp.ne.s32.totalorder %s1802_s19, %s1458_s20  ;;  %s1463_s29 = sshll.u32 %s1555_s9, 4  ;;  %s1464_s29 = int_to_ptr.vmem [resolvable:$false] %s1463_s29 }
  0x86   : > { %s1465_s13 = scalar_lea.vmem %s1464_s29, 256  ;;  %p1466_p4 = scmp.lt.s32.totalorder %s1802_s19, %s1464_s29 }
  0x87   : > { %p1461_p3 = pnand %p1459_p12, %p1445_p1  ;;  %p1467_p13 = scmp.lt.s32.totalorder %s1465_s13, %s1458_s20 }
  0x89   : > { %p1462_p10 = pneg %p1461_p3  ;;  %p1468_p0 = por %p1467_p13, %p1466_p4 }
  0x8b   : > { %p1469_p2 = pnand %p1468_p0, %p1462_p10 }
  0x8d   : > { %1472 = shalt.err (!%p1469_p2)
}
  0x8e   : > { %1269 = dma.hbm_to_vmem [thread:$0]  (!%p1806_p11), %s1800_s14, 128, %s1802_s19, %s330_s24  }
  0x8f   : > { %p1987_p8 = scmp.ne.s32.totalorder %s1977_s16, 0 }
  0x90   : > { %s1838_s1 = sand.u32 (!%p1987_p8), 1, %s1539_s10  }
  0x91   : > { %349 = sbr.rel (%p1987_p8) target bundleno = 1096 (0x448), region = 56  ;;  %s915_s18 = sshll.u32 (!%p1987_p8), %s1838_s1, 3 }
  0x92   : > { %s352_s26 = scalar_lea.sflag (!%p1987_p8), [#allocation3], %s1838_s1  ;;  %s1844_s21 = scalar_lea.vmem (!%p1987_p8), [#allocation2], %s915_s18 }
  0x98   : > { %1518 = dma.done.wait (%p1781_p6), %s352_s26, 128  }
  0x99   : > { %1520 = vsyncadd (%p1781_p6), %s352_s26, 4294967168  ;;  %p1988_p4 = scmp.eq.s32.totalorder %s1631_s15, 0 }
  0x9b   : > { %1522 = dma.done.wait (%p1988_p4), [#allocation6], 4096   ;;  %p1989_p10 = pmov %p1988_p4 }
  0x9c   : > { %p1990_p11 = pmov %p1988_p4 }
  0x9d   : > { %1524 = vsyncadd (%p1989_p10), [#allocation6], 4294963200 }
  0x9e   : > { %1526 = dma.done.wait (%p1990_p11), [#allocation9], 4096   ;;  %p1991_p1 = pmov %p1988_p4 }
  0x9f   : > { %v1556_v0 = vmov 0.0|0.0   ;;  %vm1557_vm0 = vmmov 0   ;;  %v1558_v1 = vmov 0.0   ;;  %v407_v2 = vld [vmem:[#allocation5] sm:$0xff]  ;;  %v408_v3 = vld [vmem:[#allocation5 + $0x8] sm:$0xff]  ;;  %v409_v4 = vld [vmem:[#allocation5 + $0x10] sm:$0xff] }
  0xa0   : > { %1528 = vsyncadd (%p1991_p1), [#allocation9], 4294963200  ;;  %1137 = vmatprep.subr.bf16.mxu0 %v1556_v0  ;;  %1029 = vmatprep.mubr.msk.f32.mxu0 %vm1557_vm0, %v1558_v1  ;;  %v1138_v5 = vpack.c.bf16 %v408_v3, %v407_v2  ;;  %v410_v6 = vld [vmem:[#allocation5 + $0x18] sm:$0xff]  ;;  %v411_v8 = vld [vmem:[#allocation5 + $0x20] sm:$0xff]  ;;  %s926_s29 = sshll.u32 %s1631_s15, 7  ;;  %s405_s13 = scalar_lea.vmem [#allocation11], %s915_s18 }
  0xa1   : > { %1161 = vmatprep.subr.bf16.mxu1 %v1556_v0  ;;  %1064 = vmatprep.mubr.msk.f32.mxu1 %vm1557_vm0, %v1558_v1  ;;  %v1141_v7 = vpack.c.bf16 %v410_v6, %v409_v4  ;;  %v412_v9 = vld [vmem:[#allocation5 + $0x28] sm:$0xff]  ;;  %v501_v10 = vld [vmem:[#allocation7] sm:$0xff]  ;;  %v503_v12 = vld [vmem:[#allocation7 + $0x10] sm:$0xff]  ;;  %s797_s26 = sshll.u32 %s405_s13, 4  ;;  %s1992_s17 = sld [smem:[#allocation17_spill]]  ;;  %s1919_s26 = int_to_ptr.vmem [resolvable:$true] %s797_s26 }
  0xa2   : > { %1139 = vmatpush3.bf16.msra.mxu0 %v1138_v5  ;;  %v502_v11 = vld [vmem:[#allocation7 + $0x8] sm:$0xff]  ;;  %v504_v13 = vld [vmem:[#allocation7 + $0x18] sm:$0xff]  ;;  %v1144_v14 = vpack.c.bf16 %v412_v9, %v411_v8  ;;  %v413_v16 = vld [vmem:[#allocation5 + $0x30] sm:$0xff]  ;;  %s784_s19 = scalar_lea.sflag [#allocation4], %s1838_s1  ;;  %s1473_s22 = scalar_lea.vmem %s1919_s26, 128 }
  0xa3   : > { %1140 = vmatprep.subr.bf16.mxu0 %v1556_v0  ;;  %v1162_v15 = vpack.c.bf16 %v502_v11, %v501_v10  ;;  %v414_v17 = vld [vmem:[#allocation5 + $0x38] sm:$0xff]  ;;  %v1165_v18 = vpack.c.bf16 %v504_v13, %v503_v12  ;;  %v505_v19 = vld [vmem:[#allocation7 + $0x20] sm:$0xff]  ;;  %v506_v20 = vld [vmem:[#allocation7 + $0x28] sm:$0xff]  ;;  %p1474_p6 = scmp.ne.s32.totalorder %s1919_s26, %s1473_s22  ;;  %p1993_p5 = scmp.ne.s32.totalorder %s1984_s23, 0 }
  0xa4   : > { %v1147_v21 = vpack.c.bf16 %v414_v17, %v413_v16  ;;  %v415_v22 = vld [vmem:[#allocation5 + $0x40] sm:$0xff]  ;;  %v416_v23 = vld [vmem:[#allocation5 + $0x48] sm:$0xff]  ;;  %v1168_v24 = vpack.c.bf16 %v506_v20, %v505_v19  ;;  %v507_v25 = vld [vmem:[#allocation7 + $0x30] sm:$0xff]  ;;  %s1559_s15 = smov [#allocation11]  }
  0xa5   : > { %1163 = vmatpush3.bf16.msra.mxu1 %v1162_v15  ;;  %v508_v26 = vld [vmem:[#allocation7 + $0x38] sm:$0xff]  ;;  %v1150_v27 = vpack.c.bf16 %v416_v23, %v415_v22  ;;  %v417_v28 = vld [vmem:[#allocation5 + $0x50] sm:$0xff]  ;;  %v509_v31 = vld [vmem:[#allocation7 + $0x40] sm:$0xff]  ;;  %p1475_p7 = pnand %p1474_p6, %p1993_p5  ;;  %s1477_s18 = sshll.u32 %s1559_s15, 4  ;;  %s1478_s18 = int_to_ptr.vmem [resolvable:$false] %s1477_s18 }
  0xa6   : > { %1142 = vmatpush3.bf16.msra.mxu0 %v1141_v7  ;;  %1164 = vmatprep.subr.bf16.mxu1 %v1556_v0  ;;  %v418_v29 = vld [vmem:[#allocation5 + $0x58] sm:$0xff]  ;;  %v1171_v30 = vpack.c.bf16 %v508_v26, %v507_v25  ;;  %v510_v32 = vld [vmem:[#allocation7 + $0x48] sm:$0xff]  ;;  %v419_v34 = vld [vmem:[#allocation5 + $0x60] sm:$0xff]  ;;  %s1479_s24 = scalar_lea.vmem %s1478_s18, 256  ;;  %p1480_p12 = scmp.lt.s32.totalorder %s1919_s26, %s1478_s18 }
  0xa7   : > { %1143 = vmatprep.subr.bf16.mxu0 %v1556_v0  ;;  %v1153_v33 = vpack.c.bf16 %v418_v29, %v417_v28  ;;  %v420_v35 = vld [vmem:[#allocation5 + $0x68] sm:$0xff]  ;;  %v1174_v36 = vpack.c.bf16 %v510_v32, %v509_v31  ;;  %v421_v38 = vld [vmem:[#allocation5 + $0x70] sm:$0xff]  ;;  %v422_v39 = vld [vmem:[#allocation5 + $0x78] sm:$0xff]  ;;  %s1917_s14 = scalar_lea.hbm %s1992_s17, %s926_s29  ;;  %p1476_p9 = pneg %p1475_p7 }
  0xa8   : > { %v1156_v37 = vpack.c.bf16 %v420_v35, %v419_v34  ;;  %v1159_v40 = vpack.c.bf16 %v422_v39, %v421_v38  ;;  %v406_v41 = vld [vmem:[%s1844_s21] sm:$0xff]  ;;  %v513_v45 = vld [vmem:[#allocation7 + $0x60] sm:$0xff]  ;;  %v514_v46 = vld [vmem:[#allocation7 + $0x68] sm:$0xff]  ;;  %p1481_p3 = scmp.lt.s32.totalorder %s1479_s24, %s1473_s22 }
  0xa9   : > { %1166 = vmatpush3.bf16.msra.mxu1 %v1165_v18  ;;  %v511_v42 = vld [vmem:[#allocation7 + $0x50] sm:$0xff]  ;;  %v512_v43 = vld [vmem:[#allocation7 + $0x58] sm:$0xff]  ;;  %v1180_v47 = vpack.c.bf16 %v514_v46, %v513_v45  ;;  %v595_v51 = vld [vmem:[#allocation8] sm:$0xff] }
  0xaa   : > { %1145 = vmatpush3.bf16.msra.mxu0 %v1144_v14  ;;  %1167 = vmatprep.subr.bf16.mxu1 %v1556_v0  ;;  %v1177_v44 = vpack.c.bf16 %v512_v43, %v511_v42  ;;  %v515_v48 = vld [vmem:[#allocation7 + $0x70] sm:$0xff]  ;;  %v516_v49 = vld [vmem:[#allocation7 + $0x78] sm:$0xff]  ;;  %v596_v52 = vld [vmem:[#allocation8 + $0x8] sm:$0xff]  ;;  %p1482_p13 = por %p1481_p3, %p1480_p12 }
  0xab   : > { %1146 = vmatprep.subr.bf16.mxu0 %v1556_v0  ;;  %v1183_v50 = vpack.c.bf16 %v516_v49, %v515_v48  ;;  %v597_v53 = vld [vmem:[#allocation8 + $0x10] sm:$0xff]  ;;  %v1186_v54 = vpack.c.bf16 %v596_v52, %v595_v51  ;;  %v598_v55 = vld [vmem:[#allocation8 + $0x18] sm:$0xff]  ;;  %v599_v57 = vld [vmem:[#allocation8 + $0x20] sm:$0xff] }
  0xac   : > { %v1189_v56 = vpack.c.bf16 %v598_v55, %v597_v53  ;;  %v600_v58 = vld [vmem:[#allocation8 + $0x28] sm:$0xff]  ;;  %v601_v60 = vld [vmem:[#allocation8 + $0x30] sm:$0xff]  ;;  %v602_v61 = vld [vmem:[#allocation8 + $0x38] sm:$0xff]  ;;  %p1483_p0 = pnand %p1482_p13, %p1476_p9 }
  0xad   : > { %1169 = vmatpush3.bf16.msra.mxu1 %v1168_v24  ;;  %v1192_v59 = vpack.c.bf16 %v600_v58, %v599_v57  ;;  %v1195_v62 = vpack.c.bf16 %v602_v61, %v601_v60  ;;  %v603_v63 = vld [vmem:[#allocation8 + $0x40] sm:$0xff]  ;;  %v604_v2 = vld [vmem:[#allocation8 + $0x48] sm:$0xff]  ;;  %v921_v4 = vld [vmem:[%s1966_s5] ss:$0 sm:$0xff] }
  0xae   : > { %1148 = vmatpush3.bf16.msra.mxu0 %v1147_v21  ;;  %1170 = vmatprep.subr.bf16.mxu1 %v1556_v0  ;;  %v1198_v3 = vpack.c.bf16 %v604_v2, %v603_v63  ;;  %v605_v9 = vld [vmem:[#allocation8 + $0x50] sm:$0xff]  ;;  %v606_v10 = vld [vmem:[#allocation8 + $0x58] sm:$0xff]  ;;  %v607_v12 = vld [vmem:[#allocation8 + $0x60] sm:$0xff] }
  0xaf   : > { %1149 = vmatprep.subr.bf16.mxu0 %v1556_v0  ;;  %v1201_v11 = vpack.c.bf16 %v606_v10, %v605_v9  ;;  %v608_v13 = vld [vmem:[#allocation8 + $0x68] sm:$0xff]  ;;  %v609_v15 = vld [vmem:[#allocation8 + $0x70] sm:$0xff]  ;;  %v610_v16 = vld [vmem:[#allocation8 + $0x78] sm:$0xff] }
  0xb0   : > { %v1204_v14 = vpack.c.bf16 %v608_v13, %v607_v12  ;;  %v1207_v17 = vpack.c.bf16 %v610_v16, %v609_v15  ;;  %v689_v18 = vld [vmem:[#allocation10] sm:$0xff]  ;;  %v690_v19 = vld [vmem:[#allocation10 + $0x8] sm:$0xff]  ;;  %v691_v20 = vld [vmem:[#allocation10 + $0x10] sm:$0xff] }
  0xb1   : > { %1172 = vmatpush3.bf16.msra.mxu1 %v1171_v30  ;;  %v692_v21 = vld [vmem:[#allocation10 + $0x18] sm:$0xff]  ;;  %v693_v23 = vld [vmem:[#allocation10 + $0x20] sm:$0xff]  ;;  %v694_v24 = vld [vmem:[#allocation10 + $0x28] sm:$0xff] }
  0xb2   : > { %1151 = vmatpush3.bf16.msra.mxu0 %v1150_v27  ;;  %1173 = vmatprep.subr.bf16.mxu1 %v1556_v0  ;;  %v1213_v22 = vpack.c.bf16 %v692_v21, %v691_v20  ;;  %v1216_v25 = vpack.c.bf16 %v694_v24, %v693_v23  ;;  %v695_v26 = vld [vmem:[#allocation10 + $0x30] sm:$0xff]  ;;  %v696_v27 = vld [vmem:[#allocation10 + $0x38] sm:$0xff]  ;;  %v697_v29 = vld [vmem:[#allocation10 + $0x40] sm:$0xff] }
  0xb3   : > { %1152 = vmatprep.subr.bf16.mxu0 %v1556_v0  ;;  %v1219_v28 = vpack.c.bf16 %v696_v27, %v695_v26  ;;  %v698_v30 = vld [vmem:[#allocation10 + $0x48] sm:$0xff]  ;;  %v922_v32 = vld [vmem:[%s1967_s6] ss:$0 sm:$0xff]  ;;  %v700_v38 = vld [vmem:[#allocation10 + $0x58] sm:$0xff] }
  0xb4   : > { %v1222_v31 = vpack.c.bf16 %v698_v30, %v697_v29  ;;  %v703_v43 = vld [vmem:[#allocation10 + $0x70] sm:$0xff] }
  0xb5   : > { %1175 = vmatpush3.bf16.msra.mxu1 %v1174_v36  ;;  %v923_v46 = vld [vmem:[%s1968_s7] ss:$0 sm:$0xff] }
  0xb6   : > { %1154 = vmatpush3.bf16.msra.mxu0 %v1153_v33  ;;  %1176 = vmatprep.subr.bf16.mxu1 %v1556_v0  ;;  %v924_v51 = vld [vmem:[%s1969_s8] ss:$0 sm:$0xff] }
  0xb7   : > { %1155 = vmatprep.subr.bf16.mxu0 %v1556_v0 }
  0xb9   : > { %1178 = vmatpush3.bf16.msra.mxu1 %v1177_v44  ;;  %v704_v44 = vld [vmem:[#allocation10 + $0x78] sm:$0xff] }
  0xba   : > { %1157 = vmatpush3.bf16.msra.mxu0 %v1156_v37  ;;  %1179 = vmatprep.subr.bf16.mxu1 %v1556_v0  ;;  %v699_v37 = vld [vmem:[#allocation10 + $0x50] sm:$0xff]  ;;  %v1231_v45 = vpack.c.bf16 %v704_v44, %v703_v43 }
  0xbb   : > { %1158 = vmatprep.subr.bf16.mxu0 %v1556_v0  ;;  %v1225_v39 = vpack.c.bf16 %v700_v38, %v699_v37 }
  0xbd   : > { %1181 = vmatpush3.bf16.msra.mxu1 %v1180_v47 }
  0xbe   : > { %1160 = vmatpush3.bf16.msra.mxu0 %v1159_v40  ;;  %1182 = vmatprep.subr.bf16.mxu1 %v1556_v0  ;;  %v701_v40 = vld [vmem:[#allocation10 + $0x60] sm:$0xff] }
  0xbf   : > { %1185 = vmatprep.subr.bf16.mxu0 %v1556_v0 }
  0xc1   : > { %1030 = vmatmul.mubr.f32.vlgmr.msra.gmra.mrb[0].mxu0 %v406_v41  ;;  %1184 = vmatpush3.bf16.msra.mxu1 %v1183_v50  ;;  %v702_v41 = vld [vmem:[#allocation10 + $0x68] sm:$0xff] }
  0xc2   : > { %1099 = vmatprep.mubr.msk.f32.mxu0 %vm1557_vm0, %v1558_v1  ;;  %1209 = vmatprep.subr.bf16.mxu1 %v1556_v0  ;;  %v1228_v42 = vpack.c.bf16 %v702_v41, %v701_v40 }
  0xc3   : > { %1187 = vmatpush3.bf16.msra.mxu0 %v1186_v54 }
  0xc4   : > { %1188 = vmatprep.subr.bf16.mxu0 %v1556_v0 }
  0xc7   : > { %1190 = vmatpush3.bf16.msra.mxu0 %v1189_v56 }
  0xc8   : > { %1191 = vmatprep.subr.bf16.mxu0 %v1556_v0 }
  0xcb   : > { %1193 = vmatpush3.bf16.msra.mxu0 %v1192_v59 }
  0xcc   : > { %1194 = vmatprep.subr.bf16.mxu0 %v1556_v0 }
  0xcf   : > { %1196 = vmatpush3.bf16.msra.mxu0 %v1195_v62 }
  0xd0   : > { %1197 = vmatprep.subr.bf16.mxu0 %v1556_v0 }
  0xd3   : > { %1199 = vmatpush3.bf16.msra.mxu0 %v1198_v3 }
  0xd4   : > { %1200 = vmatprep.subr.bf16.mxu0 %v1556_v0 }
  0xd7   : > { %1202 = vmatpush3.bf16.msra.mxu0 %v1201_v11 }
  0xd8   : > { %1203 = vmatprep.subr.bf16.mxu0 %v1556_v0 }
  0xdb   : > { %1205 = vmatpush3.bf16.msra.mxu0 %v1204_v14 }
  0xdc   : > { %1206 = vmatprep.subr.bf16.mxu0 %v1556_v0 }
  0xdf   : > { %1208 = vmatpush3.bf16.msra.mxu0 %v1207_v17 }
 0x194   : > { %v496_v5 = vpop.f32.mrb[0].mxu0 }
 0x195   : > { %v497_v6 = vadd.f32 %v921_v4, %v496_v5  ;;  %v1031_v7 = vpop.f32.mrb[1].mxu0 }
 0x197   : > { %1325 = vtanh.f32 %v497_v6 }
 0x1a1   : > { %v1326_v8 = vpop.eup %1325 }
 0x1a2   : > { %1065 = vmatmul.mubr.f32.vlgmr.msra.gmra.mrb[0].mxu1 %v1326_v8 }
 0x1a3   : > { %1134 = vmatprep.mubr.msk.f32.mxu1 %vm1557_vm0, %v1558_v1  ;;  %v1210_v1 = vpack.c.bf16 %v690_v19, %v689_v18 }
 0x1a5   : > { %1211 = vmatpush3.bf16.msra.mxu1 %v1210_v1 }
 0x1a6   : > { %1212 = vmatprep.subr.bf16.mxu1 %v1556_v0 }
 0x1a9   : > { %1214 = vmatpush3.bf16.msra.mxu1 %v1213_v22 }
 0x1aa   : > { %1215 = vmatprep.subr.bf16.mxu1 %v1556_v0 }
 0x1ad   : > { %1217 = vmatpush3.bf16.msra.mxu1 %v1216_v25 }
 0x1ae   : > { %1218 = vmatprep.subr.bf16.mxu1 %v1556_v0 }
 0x1b1   : > { %1220 = vmatpush3.bf16.msra.mxu1 %v1219_v28 }
 0x1b2   : > { %1221 = vmatprep.subr.bf16.mxu1 %v1556_v0 }
 0x1b5   : > { %1223 = vmatpush3.bf16.msra.mxu1 %v1222_v31 }
 0x1b6   : > { %1224 = vmatprep.subr.bf16.mxu1 %v1556_v0 }
 0x1b9   : > { %1226 = vmatpush3.bf16.msra.mxu1 %v1225_v39 }
 0x1ba   : > { %1227 = vmatprep.subr.bf16.mxu1 %v1556_v0 }
 0x1bd   : > { %1229 = vmatpush3.bf16.msra.mxu1 %v1228_v42 }
 0x1be   : > { %1230 = vmatprep.subr.bf16.mxu1 %v1556_v0 }
 0x1c1   : > { %1232 = vmatpush3.bf16.msra.mxu1 %v1231_v45 }
 0x275   : > { %v590_v33 = vpop.f32.mrb[0].mxu1 }
 0x276   : > { %v591_v34 = vadd.f32 %v922_v32, %v590_v33  ;;  %v1066_v35 = vpop.f32.mrb[1].mxu1 }
 0x278   : > { %1327 = vtanh.f32 %v591_v34 }
 0x282   : > { %v1328_v36 = vpop.eup %1327 }
 0x283   : > { %1100 = vmatmul.mubr.f32.vlgmr.msra.gmra.mrb[2].mxu0 %v1328_v36 }
 0x356   : > { %v684_v47 = vpop.f32.mrb[2].mxu0 }
 0x357   : > { %v685_v48 = vadd.f32 %v923_v46, %v684_v47  ;;  %v1101_v49 = vpop.f32.mrb[3].mxu0 }
 0x359   : > { %1329 = vtanh.f32 %v685_v48 }
 0x363   : > { %v1330_v50 = vpop.eup %1329 }
 0x364   : > { %1135 = vmatmul.mubr.f32.vlgmr.msra.gmra.mrb[2].mxu1 %v1330_v50 }
 0x437   : > { %v778_v0 = vpop.f32.mrb[2].mxu1 }
 0x438   : > { %v779_v52 = vadd.f32 %v924_v51, %v778_v0  ;;  %v1136_v53 = vpop.f32.mrb[3].mxu1 }
 0x43a   : > { %782 = vst [vmem:[%s405_s13] sm:$0xff] %v779_v52 }
 0x43b   : > { %1486 = shalt.err (!%p1483_p0)
}
 0x43c   : > { %s1487_s1 = scalar_lea.hbm %s1917_s14, 128  ;;  %s1491_s29 = scalar_lea.hbm %s1992_s17, 256 }
 0x43d   : > { %p1488_p2 = scmp.ne.s32.totalorder %s1917_s14, %s1487_s1  ;;  %p1492_p10 = scmp.lt.u32.totalorder %s1917_s14, %s1992_s17 }
 0x43e   : > { %p1493_p11 = scmp.lt.u32.totalorder %s1491_s29, %s1487_s1  ;;  %p1495_p6 = scmp.lt.u32.totalorder %s1487_s1, %s1917_s14 }
 0x43f   : > { %p1489_p8 = pnand %p1488_p2, %p1993_p5 }
 0x440   : > { %p1494_p1 = por %p1493_p11, %p1492_p10 }
 0x441   : > { %p1490_p4 = pneg %p1489_p8 }
 0x442   : > { %p1496_p7 = por %p1495_p6, %p1494_p1 }
 0x444   : > { %p1497_p9 = pnand %p1496_p7, %p1490_p4 }
 0x446   : > { %1500 = shalt.err (!%p1497_p9)
}
 0x447   : > { %1251 = dma.vmem_to_hbm [thread:$0]  (%p1993_p5), %s1919_s26, 128, %s1917_s14, %s784_s19  }
 0x448 PF: > { %s809_s16 = sand.u32 1, %s1535_s30   ;;  %p1994_p12 = scmp.ne.s32.totalorder %s1985_s28, 0 }
 0x449   : > { %p1995_p3 = scmp.ge.s32.totalorder %s1547_s12, 2  ;;  %s810_s22 = scalar_lea.sflag [#allocation4], %s809_s16 }
 0x44b   : > { %p1271_p13 = pnand %p1995_p3, %p1994_p12 }
 0x44d   : > { %1530 = dma.done.wait (!%p1271_p13), %s810_s22, 128  }
 0x44e   : > { %1532 = vsyncadd (!%p1271_p13), %s810_s22, 4294967168  ;;  %p24_p0 = scmp.ge.s32.totalorder %s1762_s27, 4   ;;  %s1996_s30 = smov %s1539_s10 }
 0x44f   : > { %s1997_s10 = smov %s1543_s11  ;;  %s1998_s11 = smov %s1773_s25 }
 0x450   : > { %s1999_s12 = smov %s1762_s27  ;;  %26 = sbr.rel (!%p24_p0) target bundleno = 10 (0xa), region = 117 }
 0x457   :  { %815 = vsyncpa [#allocation3], 1 }
 0x458   :  { %817 = vsyncpa [#allocation3 + $0x1], 1 }
 0x459   :  { %818 = vsyncpa [#allocation6], 1 }
 0x45a   :  { %819 = vsyncpa [#allocation9], 1 }
 0x45b   :  { %820 = vsyncpa [#allocation4], 1 }
 0x45c   :  { %822 = vsyncpa [#allocation4 + $0x1], 1 }

// kernel: tpu_custom_call.1
= control target key start
LH: loop header
LB: loop body
LE: loop exit
PB: predicated region body
PF: predicated region fallthrough
CT: control target
= control target key end

     0   :  { %s1961_s0 = inlined_call_operand.hbm [shape: f32[16,128], index: 0, kind: input, shape index: {}]   ;;  %s1962_s1 = inlined_call_operand.hbm [shape: f32[128,128], index: 1, kind: input, shape index: {}]   ;;  %s1963_s2 = inlined_call_operand.hbm [shape: f32[128,128], index: 2, kind: input, shape index: {}]   ;;  %s1964_s3 = inlined_call_operand.hbm [shape: f32[128,128], index: 3, kind: input, shape index: {}]   ;;  %s1965_s4 = inlined_call_operand.hbm [shape: f32[128,128], index: 4, kind: input, shape index: {}]   ;;  %s1966_s5 = inlined_call_operand.vmem [shape: f32[1,128], index: 5, kind: input, shape index: {}]   ;;  %s1967_s6 = inlined_call_operand.vmem [shape: f32[1,128], index: 6, kind: input, shape index: {}]   ;;  %s1968_s7 = inlined_call_operand.vmem [shape: f32[1,128], index: 7, kind: input, shape index: {}]   ;;  %s1969_s8 = inlined_call_operand.vmem [shape: f32[1,128], index: 8, kind: input, shape index: {}]   ;;  %s1970_s9 = inlined_call_operand.hbm [shape: f32[16,128], index: 9, kind: output, shape index: {}]  }
   0x1   :  { %1975 = sst [smem:[#allocation16_spill]] %s1962_s1 }
   0x2   :  { %1976 = sst [smem:[#allocation17_spill]] %s1970_s9 }
   0x3   :  { %14 = vsyncpa [#allocation3], 0 }
   0x4   :  { %16 = vsyncpa [#allocation3 + $0x1], 0 }
   0x5   :  { %17 = vsyncpa [#allocation6], 0 }
   0x6   :  { %18 = vsyncpa [#allocation9], 0 }
   0x7   :  { %19 = vsyncpa [#allocation4], 0 }
   0x8   :  { %21 = vsyncpa [#allocation4 + $0x1], 0  ;;  %s1610_s30 = smov 0   ;;  %s1612_s10 = smov 0  }
   0x9   :  { %s1614_s11 = smov 0   ;;  %s1616_s12 = smov 0  }
   0xa LB: > { %s1549_s13 = smov [#allocation5]   ;;  %s1631_s15 = sadd.s32 4294967295, %s1547_s12   ;;  %s1547_s12 = sphi %s1616_s12, %s1999_s12   ;;  %s1543_s11 = sphi %s1614_s11, %s1998_s11   ;;  %s1539_s10 = sphi %s1612_s10, %s1997_s10   ;;  %s1535_s30 = sphi %s1610_s30, %s1996_s30  }
   0xb   : > { %s264_s14 = sshll.u32 %s1549_s13, 4  ;;  %p906_p0 = scmp.ge.s32.totalorder %s1547_s12, 1  ;;  %s1636_s14 = int_to_ptr.vmem [resolvable:$true] %s264_s14 }
   0xc   : > { %p1972_p1 = scmp.eq.s32.totalorder %s1631_s15, 0  ;;  %p252_p2 = scmp.lt.s32.totalorder %s1547_s12, 3 }
   0xd   : > { %s1550_s17 = smov [#allocation8]   ;;  %s1551_s20 = smov [#allocation7]  }
   0xe   : > { %p1638_p3 = pnand %p906_p0, %p252_p2  ;;  %s290_s18 = sshll.u32 %s1550_s17, 4  ;;  %s1651_s18 = int_to_ptr.vmem [resolvable:$true] %s290_s18 }
   0xf   : > { %s277_s21 = sshll.u32 %s1551_s20, 4  ;;  %s1979_s1 = sld [smem:[#allocation16_spill]]  ;;  %s1653_s21 = int_to_ptr.vmem [resolvable:$true] %s277_s21 }
  0x10   : > { %s1977_s16 = scalar_select %p1638_p3, 1, 0 }
  0x11   : > { %p1253_p5 = pneg %p1638_p3 }
  0x13   : > { %p1647_p6 = pnand %p1253_p5, %p1972_p1 }
  0x15   : > { %s1331_s24 = scalar_lea.hbm %s1979_s1, 2048  ;;  %p1663_p8 = pneg %p1647_p6 }
  0x16   : > { %p1332_p7 = scmp.ne.s32.totalorder %s1979_s1, %s1331_s24  ;;  %p1338_p11 = scmp.lt.u32.totalorder %s1331_s24, %s1979_s1 }
  0x18   : > { %p1334_p9 = pnand %p1663_p8, %p1332_p7 }
  0x1a   : > { %p1335_p10 = pneg %p1334_p9 }
  0x1c   : > { %p1340_p12 = pnand %p1338_p11, %p1335_p10 }
  0x1e   : > { %1343 = shalt.err (!%p1340_p12)
}
  0x1f   : > { %s1344_s13 = scalar_lea.vmem %s1636_s14, 2048  ;;  %p1352_p5 = scmp.lt.s32.totalorder %s1636_s14, %s1636_s14 }
  0x20   : > { %p1345_p13 = scmp.ne.s32.totalorder %s1636_s14, %s1344_s13  ;;  %p1353_p4 = scmp.lt.s32.totalorder %s1344_s13, %s1344_s13 }
  0x22   : > { %p1347_p0 = pnand %p1345_p13, %p1663_p8  ;;  %p1354_p7 = por %p1353_p4, %p1352_p5 }
  0x24   : > { %p1348_p2 = pneg %p1347_p0 }
  0x26   : > { %p1355_p9 = pnand %p1354_p7, %p1348_p2 }
  0x28   : > { %1358 = shalt.err (!%p1355_p9)
}
  0x29   : > { %s1552_s17 = smov 128   ;;  %s1553_s20 = smov 8  }
  0x2a   : > { %1256 = dma.hbm_to_vmem [thread:$0]  (!%p1647_p6), %s1979_s1, 2048, %s1636_s14, [#allocation6], %s1552_s17, %s1552_s17, %s1553_s20  }
  0x2b   : > { %s1359_s26 = scalar_lea.hbm %s1964_s3, 2048 }
  0x2c   : > { %p1360_p4 = scmp.ne.s32.totalorder %s1964_s3, %s1359_s26  ;;  %p1366_p12 = scmp.lt.u32.totalorder %s1359_s26, %s1964_s3 }
  0x2e   : > { %p1362_p10 = pnand %p1360_p4, %p1663_p8 }
  0x30   : > { %p1363_p11 = pneg %p1362_p10 }
  0x32   : > { %p1368_p13 = pnand %p1366_p12, %p1363_p11 }
  0x34   : > { %1371 = shalt.err (!%p1368_p13)
}
  0x35   : > { %s1372_s14 = scalar_lea.vmem %s1651_s18, 2048  ;;  %p1380_p7 = scmp.lt.s32.totalorder %s1651_s18, %s1651_s18 }
  0x36   : > { %p1373_p0 = scmp.ne.s32.totalorder %s1651_s18, %s1372_s14  ;;  %p1381_p9 = scmp.lt.s32.totalorder %s1372_s14, %s1372_s14 }
  0x38   : > { %p1375_p2 = pnand %p1373_p0, %p1663_p8  ;;  %p1382_p4 = por %p1381_p9, %p1380_p7 }
  0x3a   : > { %p1376_p5 = pneg %p1375_p2 }
  0x3c   : > { %p1383_p10 = pnand %p1382_p4, %p1376_p5 }
  0x3e   : > { %1386 = shalt.err (!%p1383_p10)
}
  0x3f   : > { %1262 = dma.hbm_to_vmem [thread:$0]  (!%p1647_p6), %s1964_s3, 2048, %s1651_s18, [#allocation9], %s1552_s17, %s1552_s17, %s1553_s20  }
  0x40   : > { %s1387_s25 = scalar_lea.hbm %s1963_s2, 2048 }
  0x41   : > { %p1388_p11 = scmp.ne.s32.totalorder %s1963_s2, %s1387_s25  ;;  %p1394_p0 = scmp.lt.u32.totalorder %s1387_s25, %s1963_s2 }
  0x43   : > { %p1390_p12 = pnand %p1388_p11, %p1663_p8 }
  0x45   : > { %p1391_p13 = pneg %p1390_p12 }
  0x47   : > { %p1396_p2 = pnand %p1394_p0, %p1391_p13 }
  0x49   : > { %1399 = shalt.err (!%p1396_p2)
}
  0x4a   : > { %s1400_s18 = scalar_lea.vmem %s1653_s21, 2048  ;;  %p1408_p4 = scmp.lt.s32.totalorder %s1653_s21, %s1653_s21 }
  0x4b   : > { %p1401_p5 = scmp.ne.s32.totalorder %s1653_s21, %s1400_s18  ;;  %p1409_p10 = scmp.lt.s32.totalorder %s1400_s18, %s1400_s18 }
  0x4d   : > { %p1403_p7 = pnand %p1401_p5, %p1663_p8  ;;  %p1410_p11 = por %p1409_p10, %p1408_p4 }
  0x4f   : > { %p1404_p9 = pneg %p1403_p7 }
  0x51   : > { %p1411_p12 = pnand %p1410_p11, %p1404_p9 }
  0x53   : > { %1414 = shalt.err (!%p1411_p12)
}
  0x54   : > { %1259 = dma.hbm_to_vmem [thread:$0]  (!%p1647_p6), %s1963_s2, 2048, %s1653_s21, [#allocation6], %s1552_s17, %s1552_s17, %s1553_s20  }
  0x55   : > { %s1554_s22 = smov [#allocation10]   ;;  %s1415_s26 = scalar_lea.hbm %s1965_s4, 2048 }
  0x56   : > { %s303_s23 = sshll.u32 %s1554_s22, 4  ;;  %p1416_p13 = scmp.ne.s32.totalorder %s1965_s4, %s1415_s26  ;;  %s304_s23 = int_to_ptr.vmem [resolvable:$true] %s303_s23 }
  0x57   : > { %p1422_p5 = scmp.lt.u32.totalorder %s1415_s26, %s1965_s4 }
  0x58   : > { %p1418_p0 = pnand %p1416_p13, %p1663_p8 }
  0x5a   : > { %p1419_p2 = pneg %p1418_p0 }
  0x5c   : > { %p1424_p7 = pnand %p1422_p5, %p1419_p2 }
  0x5e   : > { %1427 = shalt.err (!%p1424_p7)
}
  0x5f   : > { %s1428_s21 = scalar_lea.vmem %s304_s23, 2048  ;;  %p1436_p11 = scmp.lt.s32.totalorder %s304_s23, %s304_s23 }
  0x60   : > { %p1429_p9 = scmp.ne.s32.totalorder %s304_s23, %s1428_s21  ;;  %p1437_p12 = scmp.lt.s32.totalorder %s1428_s21, %s1428_s21 }
  0x62   : > { %p1431_p4 = pnand %p1429_p9, %p1663_p8  ;;  %p1438_p1 = por %p1437_p12, %p1436_p11 }
  0x64   : > { %p1432_p10 = pneg %p1431_p4 }
  0x66   : > { %p1439_p3 = pnand %p1438_p1, %p1432_p10 }
  0x68   : > { %1442 = shalt.err (!%p1439_p3)
}
  0x69   : > { %1265 = dma.hbm_to_vmem [thread:$0]  (!%p1647_p6), %s1965_s4, 2048, %s304_s23, [#allocation9], %s1552_s17, %s1552_s17, %s1553_s20  }
  0x6a   : > { %s905_s19 = sadd.s32 4294967294, %s1547_s12   ;;  %s1762_s27 = sadd.s32 1, %s1547_s12  }
  0x6b   : > { %s31_s22 = ssub.s32 %s1547_s12, %s1762_s27  ;;  %s34_s24 = sadd.s32 1, %s1543_s11 }
  0x6c   : > { %p32_p1 = scmp.eq.s32.totalorder %s31_s22, 0  ;;  %p41_p3 = scmp.ne.s32.totalorder %s1543_s11, %s1539_s10 }
  0x6d   : > { %p42_p8 = scmp.eq.s32.totalorder %s1547_s12, 0  ;;  %p47_p13 = scmp.ne.s32.totalorder %s1539_s10, %s1535_s30 }
  0x6e   : > { %s1773_s25 = scalar_select %p32_p1, %s1543_s11, %s34_s24  }
  0x6f   : > { %p1775_p0 = por %p42_p8, %p41_p3  ;;  %p1982_p2 = scmp.eq.s32.totalorder %s1631_s15, 0 }
  0x70   : > { %p239_p5 = scmp.eq.s32.totalorder %s1631_s15, 1  ;;  %p245_p7 = scmp.eq.s32.totalorder %s905_s19, 1 }
  0x71   : > { %p1781_p6 = por %p1982_p2, %p47_p13  ;;  %p1278_p9 = scmp.lt.s32.totalorder %s1547_s12, 2 }
  0x72   : > { %s329_s20 = sand.u32 1, %s1543_s11   ;;  %p1788_p4 = por %p239_p5, %p41_p3 }
  0x73   : > { %p1792_p10 = por %p245_p7, %p47_p13  ;;  %s912_s29 = sshll.u32 %s329_s20, 3 }
  0x74   : > { %s1984_s23 = scalar_select %p1788_p4, 1, 0 }
  0x75   : > { %s1985_s28 = scalar_select %p1792_p10, 1, 0 }
  0x76   : > { %s913_s13 = sshll.u32 %s1547_s12, 7  ;;  %s333_s9 = scalar_lea.vmem [#allocation2], %s912_s29 }
  0x77   : > { %s1800_s14 = scalar_lea.hbm %s1961_s0, %s913_s13  ;;  %s340_s19 = sshll.u32 %s333_s9, 4  ;;  %s1802_s19 = int_to_ptr.vmem [resolvable:$true] %s340_s19 }
  0x78   : > { %p1806_p11 = pnand %p1278_p9, %p1775_p0  ;;  %s330_s24 = scalar_lea.sflag [#allocation3], %s329_s20 }
  0x79   : > { %s1443_s1 = scalar_lea.hbm %s1800_s14, 128  ;;  %s1448_s18 = scalar_lea.hbm %s1961_s0, 256 }
  0x7a   : > { %p1444_p12 = scmp.ne.s32.totalorder %s1800_s14, %s1443_s1  ;;  %p1445_p1 = pneg %p1806_p11 }
  0x7b   : > { %p1449_p13 = scmp.lt.u32.totalorder %s1800_s14, %s1961_s0  ;;  %p1450_p0 = scmp.lt.u32.totalorder %s1448_s18, %s1443_s1 }
  0x7c   : > { %p1446_p3 = pnand %p1445_p1, %p1444_p12  ;;  %p1452_p5 = scmp.lt.u32.totalorder %s1443_s1, %s1800_s14 }
  0x7d   : > { %p1451_p2 = por %p1450_p0, %p1449_p13 }
  0x7e   : > { %p1447_p8 = pneg %p1446_p3 }
  0x7f   : > { %p1453_p7 = por %p1452_p5, %p1451_p2 }
  0x81   : > { %p1454_p9 = pnand %p1453_p7, %p1447_p8 }
  0x83   : > { %1457 = shalt.err (!%p1454_p9)
}
  0x84   : > { %s1458_s20 = scalar_lea.vmem %s1802_s19, 128  ;;  %s1555_s9 = smov [#allocation2]  }
  0x85   : > { %p1459_p12 = scmp.ne.s32.totalorder %s1802_s19, %s1458_s20  ;;  %s1463_s29 = sshll.u32 %s1555_s9, 4  ;;  %s1464_s29 = int_to_ptr.vmem [resolvable:$false] %s1463_s29 }
  0x86   : > { %s1465_s13 = scalar_lea.vmem %s1464_s29, 256  ;;  %p1466_p4 = scmp.lt.s32.totalorder %s1802_s19, %s1464_s29 }
  0x87   : > { %p1461_p3 = pnand %p1459_p12, %p1445_p1  ;;  %p1467_p13 = scmp.lt.s32.totalorder %s1465_s13, %s1458_s20 }
  0x89   : > { %p1462_p10 = pneg %p1461_p3  ;;  %p1468_p0 = por %p1467_p13, %p1466_p4 }
  0x8b   : > { %p1469_p2 = pnand %p1468_p0, %p1462_p10 }
  0x8d   : > { %1472 = shalt.err (!%p1469_p2)
}
  0x8e   : > { %1269 = dma.hbm_to_vmem [thread:$0]  (!%p1806_p11), %s1800_s14, 128, %s1802_s19, %s330_s24  }
  0x8f   : > { %p1987_p8 = scmp.ne.s32.totalorder %s1977_s16, 0 }
  0x90   : > { %s1838_s1 = sand.u32 (!%p1987_p8), 1, %s1539_s10  }
  0x91   : > { %349 = sbr.rel (%p1987_p8) target bundleno = 1096 (0x448), region = 56  ;;  %s915_s18 = sshll.u32 (!%p1987_p8), %s1838_s1, 3 }
  0x92   : > { %s352_s26 = scalar_lea.sflag (!%p1987_p8), [#allocation3], %s1838_s1  ;;  %s1844_s21 = scalar_lea.vmem (!%p1987_p8), [#allocation2], %s915_s18 }
  0x98   : > { %1518 = dma.done.wait (%p1781_p6), %s352_s26, 128  }
  0x99   : > { %1520 = vsyncadd (%p1781_p6), %s352_s26, 4294967168  ;;  %p1988_p4 = scmp.eq.s32.totalorder %s1631_s15, 0 }
  0x9b   : > { %1522 = dma.done.wait (%p1988_p4), [#allocation6], 4096   ;;  %p1989_p10 = pmov %p1988_p4 }
  0x9c   : > { %p1990_p11 = pmov %p1988_p4 }
  0x9d   : > { %1524 = vsyncadd (%p1989_p10), [#allocation6], 4294963200 }
  0x9e   : > { %1526 = dma.done.wait (%p1990_p11), [#allocation9], 4096   ;;  %p1991_p1 = pmov %p1988_p4 }
  0x9f   : > { %v1556_v0 = vmov 0.0|0.0   ;;  %vm1557_vm0 = vmmov 0   ;;  %v1558_v1 = vmov 0.0   ;;  %v407_v2 = vld [vmem:[#allocation5] sm:$0xff]  ;;  %v408_v3 = vld [vmem:[#allocation5 + $0x8] sm:$0xff]  ;;  %v409_v4 = vld [vmem:[#allocation5 + $0x10] sm:$0xff] }
  0xa0   : > { %1528 = vsyncadd (%p1991_p1), [#allocation9], 4294963200  ;;  %1137 = vmatprep.subr.bf16.mxu0 %v1556_v0  ;;  %1029 = vmatprep.mubr.msk.f32.mxu0 %vm1557_vm0, %v1558_v1  ;;  %v1138_v5 = vpack.c.bf16 %v408_v3, %v407_v2  ;;  %v410_v6 = vld [vmem:[#allocation5 + $0x18] sm:$0xff]  ;;  %v411_v8 = vld [vmem:[#allocation5 + $0x20] sm:$0xff]  ;;  %s926_s29 = sshll.u32 %s1631_s15, 7  ;;  %s405_s13 = scalar_lea.vmem [#allocation11], %s915_s18 }
  0xa1   : > { %1161 = vmatprep.subr.bf16.mxu1 %v1556_v0  ;;  %1064 = vmatprep.mubr.msk.f32.mxu1 %vm1557_vm0, %v1558_v1  ;;  %v1141_v7 = vpack.c.bf16 %v410_v6, %v409_v4  ;;  %v412_v9 = vld [vmem:[#allocation5 + $0x28] sm:$0xff]  ;;  %v501_v10 = vld [vmem:[#allocation7] sm:$0xff]  ;;  %v503_v12 = vld [vmem:[#allocation7 + $0x10] sm:$0xff]  ;;  %s797_s26 = sshll.u32 %s405_s13, 4  ;;  %s1992_s17 = sld [smem:[#allocation17_spill]]  ;;  %s1919_s26 = int_to_ptr.vmem [resolvable:$true] %s797_s26 }
  0xa2   : > { %1139 = vmatpush3.bf16.msra.mxu0 %v1138_v5  ;;  %v502_v11 = vld [vmem:[#allocation7 + $0x8] sm:$0xff]  ;;  %v504_v13 = vld [vmem:[#allocation7 + $0x18] sm:$0xff]  ;;  %v1144_v14 = vpack.c.bf16 %v412_v9, %v411_v8  ;;  %v413_v16 = vld [vmem:[#allocation5 + $0x30] sm:$0xff]  ;;  %s784_s19 = scalar_lea.sflag [#allocation4], %s1838_s1  ;;  %s1473_s22 = scalar_lea.vmem %s1919_s26, 128 }
  0xa3   : > { %1140 = vmatprep.subr.bf16.mxu0 %v1556_v0  ;;  %v1162_v15 = vpack.c.bf16 %v502_v11, %v501_v10  ;;  %v414_v17 = vld [vmem:[#allocation5 + $0x38] sm:$0xff]  ;;  %v1165_v18 = vpack.c.bf16 %v504_v13, %v503_v12  ;;  %v505_v19 = vld [vmem:[#allocation7 + $0x20] sm:$0xff]  ;;  %v506_v20 = vld [vmem:[#allocation7 + $0x28] sm:$0xff]  ;;  %p1474_p6 = scmp.ne.s32.totalorder %s1919_s26, %s1473_s22  ;;  %p1993_p5 = scmp.ne.s32.totalorder %s1984_s23, 0 }
  0xa4   : > { %v1147_v21 = vpack.c.bf16 %v414_v17, %v413_v16  ;;  %v415_v22 = vld [vmem:[#allocation5 + $0x40] sm:$0xff]  ;;  %v416_v23 = vld [vmem:[#allocation5 + $0x48] sm:$0xff]  ;;  %v1168_v24 = vpack.c.bf16 %v506_v20, %v505_v19  ;;  %v507_v25 = vld [vmem:[#allocation7 + $0x30] sm:$0xff]  ;;  %s1559_s15 = smov [#allocation11]  }
  0xa5   : > { %1163 = vmatpush3.bf16.msra.mxu1 %v1162_v15  ;;  %v508_v26 = vld [vmem:[#allocation7 + $0x38] sm:$0xff]  ;;  %v1150_v27 = vpack.c.bf16 %v416_v23, %v415_v22  ;;  %v417_v28 = vld [vmem:[#allocation5 + $0x50] sm:$0xff]  ;;  %v509_v31 = vld [vmem:[#allocation7 + $0x40] sm:$0xff]  ;;  %p1475_p7 = pnand %p1474_p6, %p1993_p5  ;;  %s1477_s18 = sshll.u32 %s1559_s15, 4  ;;  %s1478_s18 = int_to_ptr.vmem [resolvable:$false] %s1477_s18 }
  0xa6   : > { %1142 = vmatpush3.bf16.msra.mxu0 %v1141_v7  ;;  %1164 = vmatprep.subr.bf16.mxu1 %v1556_v0  ;;  %v418_v29 = vld [vmem:[#allocation5 + $0x58] sm:$0xff]  ;;  %v1171_v30 = vpack.c.bf16 %v508_v26, %v507_v25  ;;  %v510_v32 = vld [vmem:[#allocation7 + $0x48] sm:$0xff]  ;;  %v419_v34 = vld [vmem:[#allocation5 + $0x60] sm:$0xff]  ;;  %s1479_s24 = scalar_lea.vmem %s1478_s18, 256  ;;  %p1480_p12 = scmp.lt.s32.totalorder %s1919_s26, %s1478_s18 }
  0xa7   : > { %1143 = vmatprep.subr.bf16.mxu0 %v1556_v0  ;;  %v1153_v33 = vpack.c.bf16 %v418_v29, %v417_v28  ;;  %v420_v35 = vld [vmem:[#allocation5 + $0x68] sm:$0xff]  ;;  %v1174_v36 = vpack.c.bf16 %v510_v32, %v509_v31  ;;  %v421_v38 = vld [vmem:[#allocation5 + $0x70] sm:$0xff]  ;;  %v422_v39 = vld [vmem:[#allocation5 + $0x78] sm:$0xff]  ;;  %s1917_s14 = scalar_lea.hbm %s1992_s17, %s926_s29  ;;  %p1476_p9 = pneg %p1475_p7 }
  0xa8   : > { %v1156_v37 = vpack.c.bf16 %v420_v35, %v419_v34  ;;  %v1159_v40 = vpack.c.bf16 %v422_v39, %v421_v38  ;;  %v406_v41 = vld [vmem:[%s1844_s21] sm:$0xff]  ;;  %v513_v45 = vld [vmem:[#allocation7 + $0x60] sm:$0xff]  ;;  %v514_v46 = vld [vmem:[#allocation7 + $0x68] sm:$0xff]  ;;  %p1481_p3 = scmp.lt.s32.totalorder %s1479_s24, %s1473_s22 }
  0xa9   : > { %1166 = vmatpush3.bf16.msra.mxu1 %v1165_v18  ;;  %v511_v42 = vld [vmem:[#allocation7 + $0x50] sm:$0xff]  ;;  %v512_v43 = vld [vmem:[#allocation7 + $0x58] sm:$0xff]  ;;  %v1180_v47 = vpack.c.bf16 %v514_v46, %v513_v45  ;;  %v595_v51 = vld [vmem:[#allocation8] sm:$0xff] }
  0xaa   : > { %1145 = vmatpush3.bf16.msra.mxu0 %v1144_v14  ;;  %1167 = vmatprep.subr.bf16.mxu1 %v1556_v0  ;;  %v1177_v44 = vpack.c.bf16 %v512_v43, %v511_v42  ;;  %v515_v48 = vld [vmem:[#allocation7 + $0x70] sm:$0xff]  ;;  %v516_v49 = vld [vmem:[#allocation7 + $0x78] sm:$0xff]  ;;  %v596_v52 = vld [vmem:[#allocation8 + $0x8] sm:$0xff]  ;;  %p1482_p13 = por %p1481_p3, %p1480_p12 }
  0xab   : > { %1146 = vmatprep.subr.bf16.mxu0 %v1556_v0  ;;  %v1183_v50 = vpack.c.bf16 %v516_v49, %v515_v48  ;;  %v597_v53 = vld [vmem:[#allocation8 + $0x10] sm:$0xff]  ;;  %v1186_v54 = vpack.c.bf16 %v596_v52, %v595_v51  ;;  %v598_v55 = vld [vmem:[#allocation8 + $0x18] sm:$0xff]  ;;  %v599_v57 = vld [vmem:[#allocation8 + $0x20] sm:$0xff] }
  0xac   : > { %v1189_v56 = vpack.c.bf16 %v598_v55, %v597_v53  ;;  %v600_v58 = vld [vmem:[#allocation8 + $0x28] sm:$0xff]  ;;  %v601_v60 = vld [vmem:[#allocation8 + $0x30] sm:$0xff]  ;;  %v602_v61 = vld [vmem:[#allocation8 + $0x38] sm:$0xff]  ;;  %p1483_p0 = pnand %p1482_p13, %p1476_p9 }
  0xad   : > { %1169 = vmatpush3.bf16.msra.mxu1 %v1168_v24  ;;  %v1192_v59 = vpack.c.bf16 %v600_v58, %v599_v57  ;;  %v1195_v62 = vpack.c.bf16 %v602_v61, %v601_v60  ;;  %v603_v63 = vld [vmem:[#allocation8 + $0x40] sm:$0xff]  ;;  %v604_v2 = vld [vmem:[#allocation8 + $0x48] sm:$0xff]  ;;  %v921_v4 = vld [vmem:[%s1966_s5] ss:$0 sm:$0xff] }
  0xae   : > { %1148 = vmatpush3.bf16.msra.mxu0 %v1147_v21  ;;  %1170 = vmatprep.subr.bf16.mxu1 %v1556_v0  ;;  %v1198_v3 = vpack.c.bf16 %v604_v2, %v603_v63  ;;  %v605_v9 = vld [vmem:[#allocation8 + $0x50] sm:$0xff]  ;;  %v606_v10 = vld [vmem:[#allocation8 + $0x58] sm:$0xff]  ;;  %v607_v12 = vld [vmem:[#allocation8 + $0x60] sm:$0xff] }
  0xaf   : > { %1149 = vmatprep.subr.bf16.mxu0 %v1556_v0  ;;  %v1201_v11 = vpack.c.bf16 %v606_v10, %v605_v9  ;;  %v608_v13 = vld [vmem:[#allocation8 + $0x68] sm:$0xff]  ;;  %v609_v15 = vld [vmem:[#allocation8 + $0x70] sm:$0xff]  ;;  %v610_v16 = vld [vmem:[#allocation8 + $0x78] sm:$0xff] }
  0xb0   : > { %v1204_v14 = vpack.c.bf16 %v608_v13, %v607_v12  ;;  %v1207_v17 = vpack.c.bf16 %v610_v16, %v609_v15  ;;  %v689_v18 = vld [vmem:[#allocation10] sm:$0xff]  ;;  %v690_v19 = vld [vmem:[#allocation10 + $0x8] sm:$0xff]  ;;  %v691_v20 = vld [vmem:[#allocation10 + $0x10] sm:$0xff] }
  0xb1   : > { %1172 = vmatpush3.bf16.msra.mxu1 %v1171_v30  ;;  %v692_v21 = vld [vmem:[#allocation10 + $0x18] sm:$0xff]  ;;  %v693_v23 = vld [vmem:[#allocation10 + $0x20] sm:$0xff]  ;;  %v694_v24 = vld [vmem:[#allocation10 + $0x28] sm:$0xff] }
  0xb2   : > { %1151 = vmatpush3.bf16.msra.mxu0 %v1150_v27  ;;  %1173 = vmatprep.subr.bf16.mxu1 %v1556_v0  ;;  %v1213_v22 = vpack.c.bf16 %v692_v21, %v691_v20  ;;  %v1216_v25 = vpack.c.bf16 %v694_v24, %v693_v23  ;;  %v695_v26 = vld [vmem:[#allocation10 + $0x30] sm:$0xff]  ;;  %v696_v27 = vld [vmem:[#allocation10 + $0x38] sm:$0xff]  ;;  %v697_v29 = vld [vmem:[#allocation10 + $0x40] sm:$0xff] }
  0xb3   : > { %1152 = vmatprep.subr.bf16.mxu0 %v1556_v0  ;;  %v1219_v28 = vpack.c.bf16 %v696_v27, %v695_v26  ;;  %v698_v30 = vld [vmem:[#allocation10 + $0x48] sm:$0xff]  ;;  %v922_v32 = vld [vmem:[%s1967_s6] ss:$0 sm:$0xff]  ;;  %v700_v38 = vld [vmem:[#allocation10 + $0x58] sm:$0xff] }
  0xb4   : > { %v1222_v31 = vpack.c.bf16 %v698_v30, %v697_v29  ;;  %v703_v43 = vld [vmem:[#allocation10 + $0x70] sm:$0xff] }
  0xb5   : > { %1175 = vmatpush3.bf16.msra.mxu1 %v1174_v36  ;;  %v923_v46 = vld [vmem:[%s1968_s7] ss:$0 sm:$0xff] }
  0xb6   : > { %1154 = vmatpush3.bf16.msra.mxu0 %v1153_v33  ;;  %1176 = vmatprep.subr.bf16.mxu1 %v1556_v0  ;;  %v924_v51 = vld [vmem:[%s1969_s8] ss:$0 sm:$0xff] }
  0xb7   : > { %1155 = vmatprep.subr.bf16.mxu0 %v1556_v0 }
  0xb9   : > { %1178 = vmatpush3.bf16.msra.mxu1 %v1177_v44  ;;  %v704_v44 = vld [vmem:[#allocation10 + $0x78] sm:$0xff] }
  0xba   : > { %1157 = vmatpush3.bf16.msra.mxu0 %v1156_v37  ;;  %1179 = vmatprep.subr.bf16.mxu1 %v1556_v0  ;;  %v699_v37 = vld [vmem:[#allocation10 + $0x50] sm:$0xff]  ;;  %v1231_v45 = vpack.c.bf16 %v704_v44, %v703_v43 }
  0xbb   : > { %1158 = vmatprep.subr.bf16.mxu0 %v1556_v0  ;;  %v1225_v39 = vpack.c.bf16 %v700_v38, %v699_v37 }
  0xbd   : > { %1181 = vmatpush3.bf16.msra.mxu1 %v1180_v47 }
  0xbe   : > { %1160 = vmatpush3.bf16.msra.mxu0 %v1159_v40  ;;  %1182 = vmatprep.subr.bf16.mxu1 %v1556_v0  ;;  %v701_v40 = vld [vmem:[#allocation10 + $0x60] sm:$0xff] }
  0xbf   : > { %1185 = vmatprep.subr.bf16.mxu0 %v1556_v0 }
  0xc1   : > { %1030 = vmatmul.mubr.f32.vlgmr.msra.gmra.mrb[0].mxu0 %v406_v41  ;;  %1184 = vmatpush3.bf16.msra.mxu1 %v1183_v50  ;;  %v702_v41 = vld [vmem:[#allocation10 + $0x68] sm:$0xff] }
  0xc2   : > { %1099 = vmatprep.mubr.msk.f32.mxu0 %vm1557_vm0, %v1558_v1  ;;  %1209 = vmatprep.subr.bf16.mxu1 %v1556_v0  ;;  %v1228_v42 = vpack.c.bf16 %v702_v41, %v701_v40 }
  0xc3   : > { %1187 = vmatpush3.bf16.msra.mxu0 %v1186_v54 }
  0xc4   : > { %1188 = vmatprep.subr.bf16.mxu0 %v1556_v0 }
  0xc7   : > { %1190 = vmatpush3.bf16.msra.mxu0 %v1189_v56 }
  0xc8   : > { %1191 = vmatprep.subr.bf16.mxu0 %v1556_v0 }
  0xcb   : > { %1193 = vmatpush3.bf16.msra.mxu0 %v1192_v59 }
  0xcc   : > { %1194 = vmatprep.subr.bf16.mxu0 %v1556_v0 }
  0xcf   : > { %1196 = vmatpush3.bf16.msra.mxu0 %v1195_v62 }
  0xd0   : > { %1197 = vmatprep.subr.bf16.mxu0 %v1556_v0 }
  0xd3   : > { %1199 = vmatpush3.bf16.msra.mxu0 %v1198_v3 }
  0xd4   : > { %1200 = vmatprep.subr.bf16.mxu0 %v1556_v0 }
  0xd7   : > { %1202 = vmatpush3.bf16.msra.mxu0 %v1201_v11 }
  0xd8   : > { %1203 = vmatprep.subr.bf16.mxu0 %v1556_v0 }
  0xdb   : > { %1205 = vmatpush3.bf16.msra.mxu0 %v1204_v14 }
  0xdc   : > { %1206 = vmatprep.subr.bf16.mxu0 %v1556_v0 }
  0xdf   : > { %1208 = vmatpush3.bf16.msra.mxu0 %v1207_v17 }
 0x194   : > { %v496_v5 = vpop.f32.mrb[0].mxu0 }
 0x195   : > { %v497_v6 = vadd.f32 %v921_v4, %v496_v5  ;;  %v1031_v7 = vpop.f32.mrb[1].mxu0 }
 0x197   : > { %1325 = vtanh.f32 %v497_v6 }
 0x1a1   : > { %v1326_v8 = vpop.eup %1325 }
 0x1a2   : > { %1065 = vmatmul.mubr.f32.vlgmr.msra.gmra.mrb[0].mxu1 %v1326_v8 }
 0x1a3   : > { %1134 = vmatprep.mubr.msk.f32.mxu1 %vm1557_vm0, %v1558_v1  ;;  %v1210_v1 = vpack.c.bf16 %v690_v19, %v689_v18 }
 0x1a5   : > { %1211 = vmatpush3.bf16.msra.mxu1 %v1210_v1 }
 0x1a6   : > { %1212 = vmatprep.subr.bf16.mxu1 %v1556_v0 }
 0x1a9   : > { %1214 = vmatpush3.bf16.msra.mxu1 %v1213_v22 }
 0x1aa   : > { %1215 = vmatprep.subr.bf16.mxu1 %v1556_v0 }
 0x1ad   : > { %1217 = vmatpush3.bf16.msra.mxu1 %v1216_v25 }
 0x1ae   : > { %1218 = vmatprep.subr.bf16.mxu1 %v1556_v0 }
 0x1b1   : > { %1220 = vmatpush3.bf16.msra.mxu1 %v1219_v28 }
 0x1b2   : > { %1221 = vmatprep.subr.bf16.mxu1 %v1556_v0 }
 0x1b5   : > { %1223 = vmatpush3.bf16.msra.mxu1 %v1222_v31 }
 0x1b6   : > { %1224 = vmatprep.subr.bf16.mxu1 %v1556_v0 }
 0x1b9   : > { %1226 = vmatpush3.bf16.msra.mxu1 %v1225_v39 }
 0x1ba   : > { %1227 = vmatprep.subr.bf16.mxu1 %v1556_v0 }
 0x1bd   : > { %1229 = vmatpush3.bf16.msra.mxu1 %v1228_v42 }
 0x1be   : > { %1230 = vmatprep.subr.bf16.mxu1 %v1556_v0 }
 0x1c1   : > { %1232 = vmatpush3.bf16.msra.mxu1 %v1231_v45 }
 0x275   : > { %v590_v33 = vpop.f32.mrb[0].mxu1 }
 0x276   : > { %v591_v34 = vadd.f32 %v922_v32, %v590_v33  ;;  %v1066_v35 = vpop.f32.mrb[1].mxu1 }
 0x278   : > { %1327 = vtanh.f32 %v591_v34 }
 0x282   : > { %v1328_v36 = vpop.eup %1327 }
 0x283   : > { %1100 = vmatmul.mubr.f32.vlgmr.msra.gmra.mrb[2].mxu0 %v1328_v36 }
 0x356   : > { %v684_v47 = vpop.f32.mrb[2].mxu0 }
 0x357   : > { %v685_v48 = vadd.f32 %v923_v46, %v684_v47  ;;  %v1101_v49 = vpop.f32.mrb[3].mxu0 }
 0x359   : > { %1329 = vtanh.f32 %v685_v48 }
 0x363   : > { %v1330_v50 = vpop.eup %1329 }
 0x364   : > { %1135 = vmatmul.mubr.f32.vlgmr.msra.gmra.mrb[2].mxu1 %v1330_v50 }
 0x437   : > { %v778_v0 = vpop.f32.mrb[2].mxu1 }
 0x438   : > { %v779_v52 = vadd.f32 %v924_v51, %v778_v0  ;;  %v1136_v53 = vpop.f32.mrb[3].mxu1 }
 0x43a   : > { %782 = vst [vmem:[%s405_s13] sm:$0xff] %v779_v52 }
 0x43b   : > { %1486 = shalt.err (!%p1483_p0)
}
 0x43c   : > { %s1487_s1 = scalar_lea.hbm %s1917_s14, 128  ;;  %s1491_s29 = scalar_lea.hbm %s1992_s17, 256 }
 0x43d   : > { %p1488_p2 = scmp.ne.s32.totalorder %s1917_s14, %s1487_s1  ;;  %p1492_p10 = scmp.lt.u32.totalorder %s1917_s14, %s1992_s17 }
 0x43e   : > { %p1493_p11 = scmp.lt.u32.totalorder %s1491_s29, %s1487_s1  ;;  %p1495_p6 = scmp.lt.u32.totalorder %s1487_s1, %s1917_s14 }
 0x43f   : > { %p1489_p8 = pnand %p1488_p2, %p1993_p5 }
 0x440   : > { %p1494_p1 = por %p1493_p11, %p1492_p10 }
 0x441   : > { %p1490_p4 = pneg %p1489_p8 }
 0x442   : > { %p1496_p7 = por %p1495_p6, %p1494_p1 }
 0x444   : > { %p1497_p9 = pnand %p1496_p7, %p1490_p4 }
 0x446   : > { %1500 = shalt.err (!%p1497_p9)
}
 0x447   : > { %1251 = dma.vmem_to_hbm [thread:$0]  (%p1993_p5), %s1919_s26, 128, %s1917_s14, %s784_s19  }
 0x448 PF: > { %s809_s16 = sand.u32 1, %s1535_s30   ;;  %p1994_p12 = scmp.ne.s32.totalorder %s1985_s28, 0 }
 0x449   : > { %p1995_p3 = scmp.ge.s32.totalorder %s1547_s12, 2  ;;  %s810_s22 = scalar_lea.sflag [#allocation4], %s809_s16 }
 0x44b   : > { %p1271_p13 = pnand %p1995_p3, %p1994_p12 }
 0x44d   : > { %1530 = dma.done.wait (!%p1271_p13), %s810_s22, 128  }
 0x44e   : > { %1532 = vsyncadd (!%p1271_p13), %s810_s22, 4294967168  ;;  %p24_p0 = scmp.ge.s32.totalorder %s1762_s27, 4   ;;  %s1996_s30 = smov %s1539_s10 }
 0x44f   : > { %s1997_s10 = smov %s1543_s11  ;;  %s1998_s11 = smov %s1773_s25 }
 0x450   : > { %s1999_s12 = smov %s1762_s27  ;;  %26 = sbr.rel (!%p24_p0) target bundleno = 10 (0xa), region = 117 }
 0x457   :  { %815 = vsyncpa [#allocation3], 1 }
 0x458   :  { %817 = vsyncpa [#allocation3 + $0x1], 1 }
 0x459   :  { %818 = vsyncpa [#allocation6], 1 }
 0x45a   :  { %819 = vsyncpa [#allocation9], 1 }
 0x45b   :  { %820 = vsyncpa [#allocation4], 1 }
 0x45c   :  { %822 = vsyncpa [#allocation4 + $0x1], 1 }

</bundles_post_ra>
